<compile_context>
chip_gen: v5e
topology: v5e:2x2
jax: 0.10.0
libtpu: 0.0.40
codegen_flags: <defaults>
</compile_context>

<pallas_src>
import functools

import jax
import jax.numpy as jnp
from jax.experimental import pallas as pl
from jax.experimental.pallas import tpu as pltpu


def _conv_bn_relu_kernel(x_ref, w_ref, scale_ref, bias_ref, o_ref, *, shifts):
    """One (batch, Cout-tile) block: 3x3 conv via 9 rolled taps + BN affine + ReLU.

    x_ref:     (Cin, Pp)        zero-padded image, flattened (Hp*Wp, tail-padded to 128n),
                                pixels on the lane axis.
    w_ref:     (9, tCout, Cin)  conv weights, tap-major (t = kh*3 + kw).
    scale_ref: (tCout, 1)       folded BN scale = gamma / sqrt(var + eps).
    bias_ref:  (tCout, 1)       folded BN bias  = beta + (conv_bias - mean) * scale.
    o_ref:     (tCout, Pp)      lane-dense output (garbage at pad/tail positions, sliced
                                away by the wrapper).
    """
    x = x_ref[...]
    acc = None
    for t, s in enumerate(shifts):                    # 9 static taps, fully unrolled
        tap = pltpu.roll(x, s, 1) if s else x         # XLU lane rotate (free wrt MXU/VPU slots)
        part = jnp.dot(w_ref[t], tap, preferred_element_type=jnp.float32)
        acc = part if acc is None else acc + part     # (tCout, Pp) f32 accumulation
    y = acc * scale_ref[...] + bias_ref[...]          # per-channel affine (conv bias + BN)
    o_ref[...] = jnp.maximum(y, 0.0).astype(o_ref.dtype)


def _round_up(x, m):
    return (x + m - 1) // m * m


def _pick_cout_tile(Cout, Cin, Pp, itemsize, budget_bytes):
    """Largest Cout tile whose (double-buffered) blocks fit the VMEM budget.

    Valid tiles are Cout itself or multiples of 8 that divide Cout (the (8,128) layout rule
    on the second-to-last block dim of the weights / scale / output blocks).
    """
    cands = sorted({Cout} | {c for c in range(8, Cout, 8) if Cout % c == 0}, reverse=True)
    x_bytes = 2 * Cin * Pp * itemsize                       # double-buffered input image block
    for t in cands:
        w_bytes = 2 * 9 * t * Cin * itemsize                # weights (worst case double-buffered)
        o_bytes = 2 * t * Pp * 4                            # double-buffered f32 output block
        sb_bytes = 2 * 2 * t * 4                            # scale + bias
        if x_bytes + w_bytes + o_bytes + sb_bytes <= budget_bytes:
            return t
    return cands[-1]


def simple_bottleneck_forward(x_nchw, conv_w, conv_b, bn_gamma, bn_beta,
                              bn_mean, bn_var, eps=1e-5,
                              matmul_dtype=jnp.float32,
                              vmem_budget_bytes=24 * 1024 * 1024,
                              vmem_limit_bytes=32 * 1024 * 1024):
    """Eval-mode SimpleBottleneck forward.

    x_nchw: (N, Cin, H, W) f32; conv_w: (Cout, Cin, 3, 3) OIHW; returns (N, Cout, H, W) f32.
    matmul_dtype=jnp.bfloat16 is recommended on all TPU generations (v5e/v6e/v7x): it halves the
    dominant HBM stream while accumulation and the BN/ReLU epilogue stay f32.
    Defaults for vmem_budget_bytes / vmem_limit_bytes are v7x-safe (64 MiB physical VMEM); on
    v5e/v6e (128 MiB physical) raise them (e.g. 64-100 MiB) for larger problem sizes.
    """
    N, Cin, H, W = x_nchw.shape
    Cout = conv_w.shape[0]
    Hp, Wp = H + 2, W + 2
    p_pad = Hp * Wp                                   # flattened zero-padded image length
    Pp = _round_up(p_pad, 128)                        # lane-dense pixel axis (unmasked stores)
    itemsize = jnp.dtype(matmul_dtype).itemsize

    # --- glue (plain JAX): cast FIRST (halves glue HBM traffic in the bf16 path), then
    # zero-pad spatially, flatten, and pad the pixel axis up to a multiple of 128.
    xm = x_nchw.astype(matmul_dtype)
    x_flat = jnp.pad(xm, ((0, 0), (0, 0), (1, 1), (1, 1))).reshape(N, Cin, p_pad)
    if Pp > p_pad:
        x_flat = jnp.pad(x_flat, ((0, 0), (0, 0), (0, Pp - p_pad)))

    # Weights: OIHW -> tap-major (9, Cout, Cin), t = kh*3 + kw.
    w9 = jnp.transpose(conv_w.astype(matmul_dtype), (2, 3, 0, 1)).reshape(9, Cout, Cin)

    # Fold conv bias + BatchNorm running stats into one per-channel f32 affine.
    scale = bn_gamma / jnp.sqrt(bn_var + eps)
    bias = bn_beta + (conv_b - bn_mean) * scale
    scale2d = scale.reshape(Cout, 1).astype(jnp.float32)
    bias2d = bias.reshape(Cout, 1).astype(jnp.float32)

    # Lane shifts: tap (kh, kw) of the flattened padded image = roll by -((kh-1)*Wp + (kw-1)).
    shifts = tuple((-((kh - 1) * Wp + (kw - 1))) % Pp
                   for kh in range(3) for kw in range(3))

    if 2 * Cin * Pp * itemsize > vmem_budget_bytes:
        # TODO(synk): row-band the pixel axis with halo'd manual DMA (pl.ANY +
        # pltpu.make_async_copy) when the padded image slab does not fit VMEM.
        raise ValueError("padded image slab exceeds the VMEM budget; raise vmem_budget_bytes "
                         "or add row-band tiling")

    tCout = _pick_cout_tile(Cout, Cin, Pp, itemsize, vmem_budget_bytes)
    n_co = Cout // tCout
    grid = (N, n_co)

    kernel = functools.partial(_conv_bn_relu_kernel, shifts=shifts)

    cost = pl.CostEstimate(
        flops=2 * N * Cout * Cin * 9 * Pp,
        transcendentals=0,
        bytes_accessed=(N * Cin * Pp * itemsize * n_co   # padded image (read once per Cout tile)
                        + 9 * Cout * Cin * itemsize      # weights
                        + N * Cout * Pp * 4              # output
                        + 2 * Cout * 4))                 # scale / bias

    def build_and_run(const_pipeline_mode):
        const_kw = ({} if const_pipeline_mode is None
                    else {"pipeline_mode": const_pipeline_mode})
        grid_spec = pltpu.PrefetchScalarGridSpec(
            num_scalar_prefetch=0,
            grid=grid,
            in_specs=[
                # Whole padded image for batch n: the largest possible pixel tile.
                pl.BlockSpec((pl.Squeezed(), Cin, Pp), lambda n, co: (n, 0, 0)),
                pl.BlockSpec((9, tCout, Cin), lambda n, co: (0, co, 0), **const_kw),
                pl.BlockSpec((tCout, 1), lambda n, co: (co, 0), **const_kw),
                pl.BlockSpec((tCout, 1), lambda n, co: (co, 0), **const_kw),
            ],
            out_specs=pl.BlockSpec((pl.Squeezed(), tCout, Pp), lambda n, co: (n, co, 0)),
        )
        return pl.pallas_call(
            kernel,
            out_shape=jax.ShapeDtypeStruct((N, Cout, Pp), jnp.float32),
            grid_spec=grid_spec,
            compiler_params=pltpu.CompilerParams(
                dimension_semantics=("parallel", "parallel"),
                vmem_limit_bytes=vmem_limit_bytes,
            ),
            cost_estimate=cost,
        )(x_flat, w9, scale2d, bias2d)

    # Single-buffer the constant-index operands (weights, BN scale/bias) when there is only one
    # Cout tile; fall back to default double-buffering if this build rejects pipeline_mode.
    if n_co == 1:
        try:
            out_flat = build_and_run(pl.Buffered(1))
        except Exception:  # pragma: no cover - depends on jax build
            out_flat = build_and_run(None)
    else:
        out_flat = build_and_run(None)

    # Drop tail padding and the zero-pad border rows/columns -> NCHW.
    return out_flat[:, :, :p_pad].reshape(N, Cout, Hp, Wp)[:, :, 1:H + 1, 1:W + 1]


def _reference_forward(x_nchw, conv_w, conv_b, bn_gamma, bn_beta, bn_mean, bn_var, eps=1e-5):
    """Pure-JAX reference (lax conv) for correctness checking."""
    y = jax.lax.conv_general_dilated(
        x_nchw, conv_w, window_strides=(1, 1), padding=((1, 1), (1, 1)),
        dimension_numbers=("NCHW", "OIHW", "NCHW"))
    y = y + conv_b[None, :, None, None]
    y = (y - bn_mean[None, :, None, None]) / jnp.sqrt(bn_var[None, :, None, None] + eps)
    y = y * bn_gamma[None, :, None, None] + bn_beta[None, :, None, None]
    return jnp.maximum(y, 0.0)


if __name__ == "__main__":
    key = jax.random.PRNGKey(0)
    k_x, k_w, k_b, k_g, k_be, k_m, k_v = jax.random.split(key, 7)

    N, Cin, Cout, H, W = 2, 4, 8, 16, 16

    x = jax.random.normal(k_x, (N, Cin, H, W), dtype=jnp.float32)
    conv_w = 0.1 * jax.random.normal(k_w, (Cout, Cin, 3, 3), dtype=jnp.float32)
    conv_b = 0.1 * jax.random.normal(k_b, (Cout,), dtype=jnp.float32)
    bn_gamma = 1.0 + 0.1 * jax.random.normal(k_g, (Cout,), dtype=jnp.float32)
    bn_beta = 0.1 * jax.random.normal(k_be, (Cout,), dtype=jnp.float32)
    bn_mean = 0.05 * jax.random.normal(k_m, (Cout,), dtype=jnp.float32)
    bn_var = jnp.abs(1.0 + 0.1 * jax.random.normal(k_v, (Cout,), dtype=jnp.float32))

    ref = _reference_forward(x, conv_w, conv_b, bn_gamma, bn_beta, bn_mean, bn_var)

    # f32 MXU path: tight tolerance vs the f32 reference.
    out = jax.block_until_ready(simple_bottleneck_forward(
        x, conv_w, conv_b, bn_gamma, bn_beta, bn_mean, bn_var))
    assert out.shape == (N, Cout, H, W)
    assert jnp.allclose(out, ref, atol=1e-4, rtol=1e-4), "f32 mismatch vs reference"

    # bf16 MXU inputs (recommended on v5e/v6e/v7x), f32 accumulation + f32 epilogue.
    out_bf16 = jax.block_until_ready(simple_bottleneck_forward(
        x, conv_w, conv_b, bn_gamma, bn_beta, bn_mean, bn_var, matmul_dtype=jnp.bfloat16))
    assert jnp.allclose(out_bf16, ref, atol=5e-2, rtol=5e-2), "bf16 mismatch vs reference"

    # Non-128-aligned spatial size: exercises the lane-dense pixel-padding path (review item).
    H2 = W2 = 10
    x2 = jax.random.normal(k_x, (N, Cin, H2, W2), dtype=jnp.float32)
    ref2 = _reference_forward(x2, conv_w, conv_b, bn_gamma, bn_beta, bn_mean, bn_var)
    out2 = jax.block_until_ready(simple_bottleneck_forward(
        x2, conv_w, conv_b, bn_gamma, bn_beta, bn_mean, bn_var))
    assert out2.shape == (N, Cout, H2, W2)
    assert jnp.allclose(out2, ref2, atol=1e-4, rtol=1e-4), "odd-size mismatch vs reference"

    print("KERNEL_OK")
</pallas_src>

<mosaic_0001>
module attributes {stable_mosaic.version = 11 : i64} {
  func.func @_conv_bn_relu_kernel(%arg0: i32, %arg1: i32, %arg2: memref<1x4x384xf32, #tpu.memory_space<vmem>>, %arg3: memref<9x8x4xf32, #tpu.memory_space<vmem>>, %arg4: memref<8x1xf32, #tpu.memory_space<vmem>>, %arg5: memref<8x1xf32, #tpu.memory_space<vmem>>, %arg6: memref<1x8x384xf32, #tpu.memory_space<vmem>>) attributes {dimension_semantics = [#tpu.dimension_semantics<parallel>, #tpu.dimension_semantics<parallel>], iteration_bounds = array<i64: 2, 1>, scalar_prefetch = 0 : i64, scratch_operands = 0 : i64, tpu.core_type = #tpu.core_type<tc>, window_params = [{transform_indices = @transform_0, window_bounds = array<i64: 1, 4, 384>}, {pipeline_mode = #tpu.pipeline_mode<synchronous>, transform_indices = @transform_1, window_bounds = array<i64: 9, 8, 4>}, {pipeline_mode = #tpu.pipeline_mode<synchronous>, transform_indices = @transform_2, window_bounds = array<i64: 8, 1>}, {pipeline_mode = #tpu.pipeline_mode<synchronous>, transform_indices = @transform_3, window_bounds = array<i64: 8, 1>}, {transform_indices = @transform_4, window_bounds = array<i64: 1, 8, 384>}]} {
    %c0 = arith.constant 0 : index
    %c0_0 = arith.constant 0 : index
    %c0_1 = arith.constant 0 : index
    %0 = vector.load %arg2[%c0, %c0_0, %c0_1] : memref<1x4x384xf32, #tpu.memory_space<vmem>>, vector<1x4x384xf32>
    %1 = vector.shape_cast %0 : vector<1x4x384xf32> to vector<4x384xf32>
    %c19_i32 = arith.constant 19 : i32
    %2 = tpu.dynamic_rotate %1 by %c19_i32 dim 1 : vector<4x384xf32>, i32 -> vector<4x384xf32>
    %c0_2 = arith.constant 0 : index
    %c0_3 = arith.constant 0 : index
    %c0_4 = arith.constant 0 : index
    %3 = vector.load %arg3[%c0_2, %c0_3, %c0_4] : memref<9x8x4xf32, #tpu.memory_space<vmem>>, vector<1x8x4xf32>
    %4 = vector.shape_cast %3 : vector<1x8x4xf32> to vector<8x4xf32>
    %cst = arith.constant dense<0.000000e+00> : vector<8x384xf32>
    %5 = tpu.matmul %4, %2, %cst {dimension_numbers = #tpu.dot_dimension_numbers<[1], [0], [0], [1], [0, 0, 1, 1], [], []>} : vector<8x4xf32>, vector<4x384xf32>, vector<8x384xf32> -> vector<8x384xf32>
    %c18_i32 = arith.constant 18 : i32
    %6 = tpu.dynamic_rotate %1 by %c18_i32 dim 1 : vector<4x384xf32>, i32 -> vector<4x384xf32>
    %c1 = arith.constant 1 : index
    %c0_5 = arith.constant 0 : index
    %c0_6 = arith.constant 0 : index
    %7 = vector.load %arg3[%c1, %c0_5, %c0_6] : memref<9x8x4xf32, #tpu.memory_space<vmem>>, vector<1x8x4xf32>
    %8 = vector.shape_cast %7 : vector<1x8x4xf32> to vector<8x4xf32>
    %cst_7 = arith.constant dense<0.000000e+00> : vector<8x384xf32>
    %9 = tpu.matmul %8, %6, %cst_7 {dimension_numbers = #tpu.dot_dimension_numbers<[1], [0], [0], [1], [0, 0, 1, 1], [], []>} : vector<8x4xf32>, vector<4x384xf32>, vector<8x384xf32> -> vector<8x384xf32>
    %10 = arith.addf %5, %9 : vector<8x384xf32>
    %c17_i32 = arith.constant 17 : i32
    %11 = tpu.dynamic_rotate %1 by %c17_i32 dim 1 : vector<4x384xf32>, i32 -> vector<4x384xf32>
    %c2 = arith.constant 2 : index
    %c0_8 = arith.constant 0 : index
    %c0_9 = arith.constant 0 : index
    %12 = vector.load %arg3[%c2, %c0_8, %c0_9] : memref<9x8x4xf32, #tpu.memory_space<vmem>>, vector<1x8x4xf32>
    %13 = vector.shape_cast %12 : vector<1x8x4xf32> to vector<8x4xf32>
    %cst_10 = arith.constant dense<0.000000e+00> : vector<8x384xf32>
    %14 = tpu.matmul %13, %11, %cst_10 {dimension_numbers = #tpu.dot_dimension_numbers<[1], [0], [0], [1], [0, 0, 1, 1], [], []>} : vector<8x4xf32>, vector<4x384xf32>, vector<8x384xf32> -> vector<8x384xf32>
    %15 = arith.addf %10, %14 : vector<8x384xf32>
    %c1_i32 = arith.constant 1 : i32
    %16 = tpu.dynamic_rotate %1 by %c1_i32 dim 1 : vector<4x384xf32>, i32 -> vector<4x384xf32>
    %c3 = arith.constant 3 : index
    %c0_11 = arith.constant 0 : index
    %c0_12 = arith.constant 0 : index
    %17 = vector.load %arg3[%c3, %c0_11, %c0_12] : memref<9x8x4xf32, #tpu.memory_space<vmem>>, vector<1x8x4xf32>
    %18 = vector.shape_cast %17 : vector<1x8x4xf32> to vector<8x4xf32>
    %cst_13 = arith.constant dense<0.000000e+00> : vector<8x384xf32>
    %19 = tpu.matmul %18, %16, %cst_13 {dimension_numbers = #tpu.dot_dimension_numbers<[1], [0], [0], [1], [0, 0, 1, 1], [], []>} : vector<8x4xf32>, vector<4x384xf32>, vector<8x384xf32> -> vector<8x384xf32>
    %20 = arith.addf %15, %19 : vector<8x384xf32>
    %c4 = arith.constant 4 : index
    %c0_14 = arith.constant 0 : index
    %c0_15 = arith.constant 0 : index
    %21 = vector.load %arg3[%c4, %c0_14, %c0_15] : memref<9x8x4xf32, #tpu.memory_space<vmem>>, vector<1x8x4xf32>
    %22 = vector.shape_cast %21 : vector<1x8x4xf32> to vector<8x4xf32>
    %cst_16 = arith.constant dense<0.000000e+00> : vector<8x384xf32>
    %23 = tpu.matmul %22, %1, %cst_16 {dimension_numbers = #tpu.dot_dimension_numbers<[1], [0], [0], [1], [0, 0, 1, 1], [], []>} : vector<8x4xf32>, vector<4x384xf32>, vector<8x384xf32> -> vector<8x384xf32>
    %24 = arith.addf %20, %23 : vector<8x384xf32>
    %c383_i32 = arith.constant 383 : i32
    %25 = tpu.dynamic_rotate %1 by %c383_i32 dim 1 : vector<4x384xf32>, i32 -> vector<4x384xf32>
    %c5 = arith.constant 5 : index
    %c0_17 = arith.constant 0 : index
    %c0_18 = arith.constant 0 : index
    %26 = vector.load %arg3[%c5, %c0_17, %c0_18] : memref<9x8x4xf32, #tpu.memory_space<vmem>>, vector<1x8x4xf32>
    %27 = vector.shape_cast %26 : vector<1x8x4xf32> to vector<8x4xf32>
    %cst_19 = arith.constant dense<0.000000e+00> : vector<8x384xf32>
    %28 = tpu.matmul %27, %25, %cst_19 {dimension_numbers = #tpu.dot_dimension_numbers<[1], [0], [0], [1], [0, 0, 1, 1], [], []>} : vector<8x4xf32>, vector<4x384xf32>, vector<8x384xf32> -> vector<8x384xf32>
    %29 = arith.addf %24, %28 : vector<8x384xf32>
    %c367_i32 = arith.constant 367 : i32
    %30 = tpu.dynamic_rotate %1 by %c367_i32 dim 1 : vector<4x384xf32>, i32 -> vector<4x384xf32>
    %c6 = arith.constant 6 : index
    %c0_20 = arith.constant 0 : index
    %c0_21 = arith.constant 0 : index
    %31 = vector.load %arg3[%c6, %c0_20, %c0_21] : memref<9x8x4xf32, #tpu.memory_space<vmem>>, vector<1x8x4xf32>
    %32 = vector.shape_cast %31 : vector<1x8x4xf32> to vector<8x4xf32>
    %cst_22 = arith.constant dense<0.000000e+00> : vector<8x384xf32>
    %33 = tpu.matmul %32, %30, %cst_22 {dimension_numbers = #tpu.dot_dimension_numbers<[1], [0], [0], [1], [0, 0, 1, 1], [], []>} : vector<8x4xf32>, vector<4x384xf32>, vector<8x384xf32> -> vector<8x384xf32>
    %34 = arith.addf %29, %33 : vector<8x384xf32>
    %c366_i32 = arith.constant 366 : i32
    %35 = tpu.dynamic_rotate %1 by %c366_i32 dim 1 : vector<4x384xf32>, i32 -> vector<4x384xf32>
    %c7 = arith.constant 7 : index
    %c0_23 = arith.constant 0 : index
    %c0_24 = arith.constant 0 : index
    %36 = vector.load %arg3[%c7, %c0_23, %c0_24] : memref<9x8x4xf32, #tpu.memory_space<vmem>>, vector<1x8x4xf32>
    %37 = vector.shape_cast %36 : vector<1x8x4xf32> to vector<8x4xf32>
    %cst_25 = arith.constant dense<0.000000e+00> : vector<8x384xf32>
    %38 = tpu.matmul %37, %35, %cst_25 {dimension_numbers = #tpu.dot_dimension_numbers<[1], [0], [0], [1], [0, 0, 1, 1], [], []>} : vector<8x4xf32>, vector<4x384xf32>, vector<8x384xf32> -> vector<8x384xf32>
    %39 = arith.addf %34, %38 : vector<8x384xf32>
    %c365_i32 = arith.constant 365 : i32
    %40 = tpu.dynamic_rotate %1 by %c365_i32 dim 1 : vector<4x384xf32>, i32 -> vector<4x384xf32>
    %c8 = arith.constant 8 : index
    %c0_26 = arith.constant 0 : index
    %c0_27 = arith.constant 0 : index
    %41 = vector.load %arg3[%c8, %c0_26, %c0_27] : memref<9x8x4xf32, #tpu.memory_space<vmem>>, vector<1x8x4xf32>
    %42 = vector.shape_cast %41 : vector<1x8x4xf32> to vector<8x4xf32>
    %cst_28 = arith.constant dense<0.000000e+00> : vector<8x384xf32>
    %43 = tpu.matmul %42, %40, %cst_28 {dimension_numbers = #tpu.dot_dimension_numbers<[1], [0], [0], [1], [0, 0, 1, 1], [], []>} : vector<8x4xf32>, vector<4x384xf32>, vector<8x384xf32> -> vector<8x384xf32>
    %44 = arith.addf %39, %43 : vector<8x384xf32>
    %c0_29 = arith.constant 0 : index
    %c0_30 = arith.constant 0 : index
    %45 = vector.load %arg4[%c0_29, %c0_30] : memref<8x1xf32, #tpu.memory_space<vmem>>, vector<8x1xf32>
    %46 = vector.broadcast %45 : vector<8x1xf32> to vector<8x384xf32>
    %47 = arith.mulf %44, %46 : vector<8x384xf32>
    %c0_31 = arith.constant 0 : index
    %c0_32 = arith.constant 0 : index
    %48 = vector.load %arg5[%c0_31, %c0_32] : memref<8x1xf32, #tpu.memory_space<vmem>>, vector<8x1xf32>
    %49 = vector.broadcast %48 : vector<8x1xf32> to vector<8x384xf32>
    %50 = arith.addf %47, %49 : vector<8x384xf32>
    %cst_33 = arith.constant 0.000000e+00 : f32
    %51 = vector.broadcast %cst_33 : f32 to vector<8x384xf32>
    %52 = arith.maximumf %50, %51 : vector<8x384xf32>
    %c0_34 = arith.constant 0 : index
    %c0_35 = arith.constant 0 : index
    %c0_36 = arith.constant 0 : index
    %53 = vector.load %arg6[%c0_34, %c0_35, %c0_36] : memref<1x8x384xf32, #tpu.memory_space<vmem>>, vector<1x8x384xf32>
    %54 = vector.shape_cast %53 : vector<1x8x384xf32> to vector<8x384xf32>
    %55 = vector.shape_cast %52 : vector<8x384xf32> to vector<1x8x384xf32>
    tpu.vector_store %arg6[%c0_34, %c0_35, %c0_36], %55 {strides = array<i32>} : memref<1x8x384xf32, #tpu.memory_space<vmem>>, vector<1x8x384xf32>,
    return
  }
  func.func @transform_0(%arg0: i32, %arg1: i32) -> (i32, i32, i32) {
    %c0_i32 = arith.constant 0 : i32
    %c0_i32_0 = arith.constant 0 : i32
    %c0_i32_1 = arith.constant 0 : i32
    return %arg0, %c0_i32, %c0_i32_0 : i32, i32, i32
  }
  func.func @transform_1(%arg0: i32, %arg1: i32) -> (i32, i32, i32) {
    %c0_i32 = arith.constant 0 : i32
    %c0_i32_0 = arith.constant 0 : i32
    %c0_i32_1 = arith.constant 0 : i32
    return %c0_i32, %arg1, %c0_i32_0 : i32, i32, i32
  }
  func.func @transform_2(%arg0: i32, %arg1: i32) -> (i32, i32) {
    %c0_i32 = arith.constant 0 : i32
    %c0_i32_0 = arith.constant 0 : i32
    return %arg1, %c0_i32 : i32, i32
  }
  func.func @transform_3(%arg0: i32, %arg1: i32) -> (i32, i32) {
    %c0_i32 = arith.constant 0 : i32
    %c0_i32_0 = arith.constant 0 : i32
    return %arg1, %c0_i32 : i32, i32
  }
  func.func @transform_4(%arg0: i32, %arg1: i32) -> (i32, i32, i32) {
    %c0_i32 = arith.constant 0 : i32
    %c0_i32_0 = arith.constant 0 : i32
    return %arg0, %arg1, %c0_i32 : i32, i32, i32
  }
}

module attributes {stable_mosaic.version = 11 : i64} {
  func.func @_conv_bn_relu_kernel(%arg0: i32, %arg1: i32, %arg2: memref<1x4x384xf32, #tpu.memory_space<vmem>>, %arg3: memref<9x8x4xf32, #tpu.memory_space<vmem>>, %arg4: memref<8x1xf32, #tpu.memory_space<vmem>>, %arg5: memref<8x1xf32, #tpu.memory_space<vmem>>, %arg6: memref<1x8x384xf32, #tpu.memory_space<vmem>>) attributes {dimension_semantics = [#tpu.dimension_semantics<parallel>, #tpu.dimension_semantics<parallel>], iteration_bounds = array<i64: 2, 1>, scalar_prefetch = 0 : i64, scratch_operands = 0 : i64, tpu.core_type = #tpu.core_type<tc>, window_params = [{transform_indices = @transform_0, window_bounds = array<i64: 1, 4, 384>}, {transform_indices = @transform_1, window_bounds = array<i64: 9, 8, 4>}, {transform_indices = @transform_2, window_bounds = array<i64: 8, 1>}, {transform_indices = @transform_3, window_bounds = array<i64: 8, 1>}, {transform_indices = @transform_4, window_bounds = array<i64: 1, 8, 384>}]} {
    %c0 = arith.constant 0 : index
    %c0_0 = arith.constant 0 : index
    %c0_1 = arith.constant 0 : index
    %0 = vector.load %arg2[%c0, %c0_0, %c0_1] : memref<1x4x384xf32, #tpu.memory_space<vmem>>, vector<1x4x384xf32>
    %1 = vector.shape_cast %0 : vector<1x4x384xf32> to vector<4x384xf32>
    %c19_i32 = arith.constant 19 : i32
    %2 = tpu.dynamic_rotate %1 by %c19_i32 dim 1 : vector<4x384xf32>, i32 -> vector<4x384xf32>
    %c0_2 = arith.constant 0 : index
    %c0_3 = arith.constant 0 : index
    %c0_4 = arith.constant 0 : index
    %3 = vector.load %arg3[%c0_2, %c0_3, %c0_4] : memref<9x8x4xf32, #tpu.memory_space<vmem>>, vector<1x8x4xf32>
    %4 = vector.shape_cast %3 : vector<1x8x4xf32> to vector<8x4xf32>
    %cst = arith.constant dense<0.000000e+00> : vector<8x384xf32>
    %5 = tpu.matmul %4, %2, %cst {dimension_numbers = #tpu.dot_dimension_numbers<[1], [0], [0], [1], [0, 0, 1, 1], [], []>} : vector<8x4xf32>, vector<4x384xf32>, vector<8x384xf32> -> vector<8x384xf32>
    %c18_i32 = arith.constant 18 : i32
    %6 = tpu.dynamic_rotate %1 by %c18_i32 dim 1 : vector<4x384xf32>, i32 -> vector<4x384xf32>
    %c1 = arith.constant 1 : index
    %c0_5 = arith.constant 0 : index
    %c0_6 = arith.constant 0 : index
    %7 = vector.load %arg3[%c1, %c0_5, %c0_6] : memref<9x8x4xf32, #tpu.memory_space<vmem>>, vector<1x8x4xf32>
    %8 = vector.shape_cast %7 : vector<1x8x4xf32> to vector<8x4xf32>
    %cst_7 = arith.constant dense<0.000000e+00> : vector<8x384xf32>
    %9 = tpu.matmul %8, %6, %cst_7 {dimension_numbers = #tpu.dot_dimension_numbers<[1], [0], [0], [1], [0, 0, 1, 1], [], []>} : vector<8x4xf32>, vector<4x384xf32>, vector<8x384xf32> -> vector<8x384xf32>
    %10 = arith.addf %5, %9 : vector<8x384xf32>
    %c17_i32 = arith.constant 17 : i32
    %11 = tpu.dynamic_rotate %1 by %c17_i32 dim 1 : vector<4x384xf32>, i32 -> vector<4x384xf32>
    %c2 = arith.constant 2 : index
    %c0_8 = arith.constant 0 : index
    %c0_9 = arith.constant 0 : index
    %12 = vector.load %arg3[%c2, %c0_8, %c0_9] : memref<9x8x4xf32, #tpu.memory_space<vmem>>, vector<1x8x4xf32>
    %13 = vector.shape_cast %12 : vector<1x8x4xf32> to vector<8x4xf32>
    %cst_10 = arith.constant dense<0.000000e+00> : vector<8x384xf32>
    %14 = tpu.matmul %13, %11, %cst_10 {dimension_numbers = #tpu.dot_dimension_numbers<[1], [0], [0], [1], [0, 0, 1, 1], [], []>} : vector<8x4xf32>, vector<4x384xf32>, vector<8x384xf32> -> vector<8x384xf32>
    %15 = arith.addf %10, %14 : vector<8x384xf32>
    %c1_i32 = arith.constant 1 : i32
    %16 = tpu.dynamic_rotate %1 by %c1_i32 dim 1 : vector<4x384xf32>, i32 -> vector<4x384xf32>
    %c3 = arith.constant 3 : index
    %c0_11 = arith.constant 0 : index
    %c0_12 = arith.constant 0 : index
    %17 = vector.load %arg3[%c3, %c0_11, %c0_12] : memref<9x8x4xf32, #tpu.memory_space<vmem>>, vector<1x8x4xf32>
    %18 = vector.shape_cast %17 : vector<1x8x4xf32> to vector<8x4xf32>
    %cst_13 = arith.constant dense<0.000000e+00> : vector<8x384xf32>
    %19 = tpu.matmul %18, %16, %cst_13 {dimension_numbers = #tpu.dot_dimension_numbers<[1], [0], [0], [1], [0, 0, 1, 1], [], []>} : vector<8x4xf32>, vector<4x384xf32>, vector<8x384xf32> -> vector<8x384xf32>
    %20 = arith.addf %15, %19 : vector<8x384xf32>
    %c4 = arith.constant 4 : index
    %c0_14 = arith.constant 0 : index
    %c0_15 = arith.constant 0 : index
    %21 = vector.load %arg3[%c4, %c0_14, %c0_15] : memref<9x8x4xf32, #tpu.memory_space<vmem>>, vector<1x8x4xf32>
    %22 = vector.shape_cast %21 : vector<1x8x4xf32> to vector<8x4xf32>
    %cst_16 = arith.constant dense<0.000000e+00> : vector<8x384xf32>
    %23 = tpu.matmul %22, %1, %cst_16 {dimension_numbers = #tpu.dot_dimension_numbers<[1], [0], [0], [1], [0, 0, 1, 1], [], []>} : vector<8x4xf32>, vector<4x384xf32>, vector<8x384xf32> -> vector<8x384xf32>
    %24 = arith.addf %20, %23 : vector<8x384xf32>
    %c383_i32 = arith.constant 383 : i32
    %25 = tpu.dynamic_rotate %1 by %c383_i32 dim 1 : vector<4x384xf32>, i32 -> vector<4x384xf32>
    %c5 = arith.constant 5 : index
    %c0_17 = arith.constant 0 : index
    %c0_18 = arith.constant 0 : index
    %26 = vector.load %arg3[%c5, %c0_17, %c0_18] : memref<9x8x4xf32, #tpu.memory_space<vmem>>, vector<1x8x4xf32>
    %27 = vector.shape_cast %26 : vector<1x8x4xf32> to vector<8x4xf32>
    %cst_19 = arith.constant dense<0.000000e+00> : vector<8x384xf32>
    %28 = tpu.matmul %27, %25, %cst_19 {dimension_numbers = #tpu.dot_dimension_numbers<[1], [0], [0], [1], [0, 0, 1, 1], [], []>} : vector<8x4xf32>, vector<4x384xf32>, vector<8x384xf32> -> vector<8x384xf32>
    %29 = arith.addf %24, %28 : vector<8x384xf32>
    %c367_i32 = arith.constant 367 : i32
    %30 = tpu.dynamic_rotate %1 by %c367_i32 dim 1 : vector<4x384xf32>, i32 -> vector<4x384xf32>
    %c6 = arith.constant 6 : index
    %c0_20 = arith.constant 0 : index
    %c0_21 = arith.constant 0 : index
    %31 = vector.load %arg3[%c6, %c0_20, %c0_21] : memref<9x8x4xf32, #tpu.memory_space<vmem>>, vector<1x8x4xf32>
    %32 = vector.shape_cast %31 : vector<1x8x4xf32> to vector<8x4xf32>
    %cst_22 = arith.constant dense<0.000000e+00> : vector<8x384xf32>
    %33 = tpu.matmul %32, %30, %cst_22 {dimension_numbers = #tpu.dot_dimension_numbers<[1], [0], [0], [1], [0, 0, 1, 1], [], []>} : vector<8x4xf32>, vector<4x384xf32>, vector<8x384xf32> -> vector<8x384xf32>
    %34 = arith.addf %29, %33 : vector<8x384xf32>
    %c366_i32 = arith.constant 366 : i32
    %35 = tpu.dynamic_rotate %1 by %c366_i32 dim 1 : vector<4x384xf32>, i32 -> vector<4x384xf32>
    %c7 = arith.constant 7 : index
    %c0_23 = arith.constant 0 : index
    %c0_24 = arith.constant 0 : index
    %36 = vector.load %arg3[%c7, %c0_23, %c0_24] : memref<9x8x4xf32, #tpu.memory_space<vmem>>, vector<1x8x4xf32>
    %37 = vector.shape_cast %36 : vector<1x8x4xf32> to vector<8x4xf32>
    %cst_25 = arith.constant dense<0.000000e+00> : vector<8x384xf32>
    %38 = tpu.matmul %37, %35, %cst_25 {dimension_numbers = #tpu.dot_dimension_numbers<[1], [0], [0], [1], [0, 0, 1, 1], [], []>} : vector<8x4xf32>, vector<4x384xf32>, vector<8x384xf32> -> vector<8x384xf32>
    %39 = arith.addf %34, %38 : vector<8x384xf32>
    %c365_i32 = arith.constant 365 : i32
    %40 = tpu.dynamic_rotate %1 by %c365_i32 dim 1 : vector<4x384xf32>, i32 -> vector<4x384xf32>
    %c8 = arith.constant 8 : index
    %c0_26 = arith.constant 0 : index
    %c0_27 = arith.constant 0 : index
    %41 = vector.load %arg3[%c8, %c0_26, %c0_27] : memref<9x8x4xf32, #tpu.memory_space<vmem>>, vector<1x8x4xf32>
    %42 = vector.shape_cast %41 : vector<1x8x4xf32> to vector<8x4xf32>
    %cst_28 = arith.constant dense<0.000000e+00> : vector<8x384xf32>
    %43 = tpu.matmul %42, %40, %cst_28 {dimension_numbers = #tpu.dot_dimension_numbers<[1], [0], [0], [1], [0, 0, 1, 1], [], []>} : vector<8x4xf32>, vector<4x384xf32>, vector<8x384xf32> -> vector<8x384xf32>
    %44 = arith.addf %39, %43 : vector<8x384xf32>
    %c0_29 = arith.constant 0 : index
    %c0_30 = arith.constant 0 : index
    %45 = vector.load %arg4[%c0_29, %c0_30] : memref<8x1xf32, #tpu.memory_space<vmem>>, vector<8x1xf32>
    %46 = vector.broadcast %45 : vector<8x1xf32> to vector<8x384xf32>
    %47 = arith.mulf %44, %46 : vector<8x384xf32>
    %c0_31 = arith.constant 0 : index
    %c0_32 = arith.constant 0 : index
    %48 = vector.load %arg5[%c0_31, %c0_32] : memref<8x1xf32, #tpu.memory_space<vmem>>, vector<8x1xf32>
    %49 = vector.broadcast %48 : vector<8x1xf32> to vector<8x384xf32>
    %50 = arith.addf %47, %49 : vector<8x384xf32>
    %cst_33 = arith.constant 0.000000e+00 : f32
    %51 = vector.broadcast %cst_33 : f32 to vector<8x384xf32>
    %52 = arith.maximumf %50, %51 : vector<8x384xf32>
    %c0_34 = arith.constant 0 : index
    %c0_35 = arith.constant 0 : index
    %c0_36 = arith.constant 0 : index
    %53 = vector.load %arg6[%c0_34, %c0_35, %c0_36] : memref<1x8x384xf32, #tpu.memory_space<vmem>>, vector<1x8x384xf32>
    %54 = vector.shape_cast %53 : vector<1x8x384xf32> to vector<8x384xf32>
    %55 = vector.shape_cast %52 : vector<8x384xf32> to vector<1x8x384xf32>
    tpu.vector_store %arg6[%c0_34, %c0_35, %c0_36], %55 {strides = array<i32>} : memref<1x8x384xf32, #tpu.memory_space<vmem>>, vector<1x8x384xf32>,
    return
  }
  func.func @transform_0(%arg0: i32, %arg1: i32) -> (i32, i32, i32) {
    %c0_i32 = arith.constant 0 : i32
    %c0_i32_0 = arith.constant 0 : i32
    %c0_i32_1 = arith.constant 0 : i32
    return %arg0, %c0_i32, %c0_i32_0 : i32, i32, i32
  }
  func.func @transform_1(%arg0: i32, %arg1: i32) -> (i32, i32, i32) {
    %c0_i32 = arith.constant 0 : i32
    %c0_i32_0 = arith.constant 0 : i32
    %c0_i32_1 = arith.constant 0 : i32
    return %c0_i32, %arg1, %c0_i32_0 : i32, i32, i32
  }
  func.func @transform_2(%arg0: i32, %arg1: i32) -> (i32, i32) {
    %c0_i32 = arith.constant 0 : i32
    %c0_i32_0 = arith.constant 0 : i32
    return %arg1, %c0_i32 : i32, i32
  }
  func.func @transform_3(%arg0: i32, %arg1: i32) -> (i32, i32) {
    %c0_i32 = arith.constant 0 : i32
    %c0_i32_0 = arith.constant 0 : i32
    return %arg1, %c0_i32 : i32, i32
  }
  func.func @transform_4(%arg0: i32, %arg1: i32) -> (i32, i32, i32) {
    %c0_i32 = arith.constant 0 : i32
    %c0_i32_0 = arith.constant 0 : i32
    return %arg0, %arg1, %c0_i32 : i32, i32, i32
  }
}

</mosaic_0001>

<bundles_post_ra>
// kernel: tpu_custom_call.1
= control target key start
LH: loop header
LB: loop body
LE: loop exit
PB: predicated region body
PF: predicated region fallthrough
CT: control target
= control target key end

     0   :  { %9 = vsyncpa [#allocation3], 0  ;;  %s1784_s0 = inlined_call_operand.vmem [shape: f32[2,4,384], index: 0, kind: input, shape index: {}]   ;;  %s1785_s1 = inlined_call_operand.vmem [shape: f32[9,8,4], index: 1, kind: input, shape index: {}]   ;;  %s1786_s2 = inlined_call_operand.vmem [shape: f32[8,1], index: 2, kind: input, shape index: {}]   ;;  %s1787_s3 = inlined_call_operand.vmem [shape: f32[8,1], index: 3, kind: input, shape index: {}]   ;;  %s1788_s4 = inlined_call_operand.hbm [shape: f32[2,8,384], index: 4, kind: output, shape index: {}]  }
   0x1   :  { %11 = vsyncpa [#allocation3 + $0x1], 0  ;;  %s1525_s15 = smov 0   ;;  %s1527_s16 = smov 0  }
   0x2   :  { %s1529_s17 = smov 0   ;;  %s1531_s18 = smov 0  }
   0x3   :  { %s1533_s19 = smov 0   ;;  %s1535_s20 = smov 0  }
   0x4 LB: > { %s1268_s21 = sadd.s32 4294967295, %s1489_s20   ;;  %s1269_s22 = sadd.s32 4294967294, %s1489_s20   ;;  %s1489_s20 = sphi %s1535_s20, %s17_s20   ;;  %s1485_s19 = sphi %s1533_s19, %s1795_s19   ;;  %s1481_s18 = sphi %s1531_s18, %s1794_s18   ;;  %s1477_s17 = sphi %s1529_s17, %s1793_s17   ;;  %s1473_s16 = sphi %s1527_s16, %s1792_s16   ;;  %s1469_s15 = sphi %s1525_s15, %s1791_s15  }
   0x5   : > { %s29_s23 = sadd.s32 1, %s1485_s19  ;;  %s142_s24 = sadd.s32 1, %s1477_s17 }
   0x6   : > { %p31_p0 = scmp.ge.s32.totalorder %s29_s23, 2  ;;  %p152_p1 = scmp.ne.s32.totalorder %s1477_s17, %s1473_s16 }
   0x7   : > { %p153_p2 = scmp.eq.s32.totalorder %s1268_s21, 1  ;;  %p158_p3 = scmp.ne.s32.totalorder %s1473_s16, %s1469_s15 }
   0x8   : > { %s1797_s23 = smov (%p31_p0, %s29_s23), 0  ;;  %p159_p5 = scmp.eq.s32.totalorder %s1269_s22, 1 }
   0x9   : > { %p1565_p4 = por %p153_p2, %p152_p1  ;;  %s137_s26 = ssub.s32 %s1485_s19, %s1797_s23 }
   0xa   : > { %p1275_p6 = scmp.ge.s32.totalorder %s1489_s20, 1  ;;  %p140_p7 = scmp.eq.s32.totalorder %s137_s26, 0 }
   0xb   : > { %p1572_p8 = por %p159_p5, %p158_p3  ;;  %p206_p9 = scmp.lt.s32.totalorder %s1489_s20, 3 }
   0xc   : > { %s1578_s28 = scalar_select %p140_p7, %s1477_s17, %s142_s24  }
   0xd   : > { %p207_p10 = pnand %p1275_p6, %p206_p9 }
   0xe   : > { %p244_p11 = scmp.lt.s32.totalorder (!%p207_p10), %s1481_s18, 1  ;;  %s1491_s8 = smov (!%p207_p10), 19  }
   0xf   : > { %210 = sbr.rel (%p207_p10) target bundleno = 360 (0x168), region = 36  ;;  %s1492_s9 = smov (!%p207_p10), 18  }
  0x10   : > { %s1493_s10 = smov (!%p207_p10), 17   ;;  %s1494_s11 = smov (!%p207_p10), 1  }
  0x11   : > { %s1495_s12 = smov (!%p207_p10), 127   ;;  %s1496_s13 = smov (!%p207_p10), 111  }
  0x12   : > { %s1497_s14 = smov (!%p207_p10), 110   ;;  %s1498_s21 = smov (!%p207_p10), 109  }
  0x13   : > { %s241_s6 = sand.u32 (!%p207_p10), 1, %s1473_s16  }
  0x14   : > { %s245_s29 = scalar_select %p244_p11, %s1481_s18, 1  ;;  %v280_v31 = vlaneseq  ;;  %vm312_vm3 = vcmask 1043456   ;;  %v286_v37 = vld [vmem:[%s1785_s1] sm:$0xff]  ;;  %vm308_vm4 = vcmask 31744   ;;  %v1277_v38 = vld [vmem:[%s1785_s1 + $0x8] sm:$0xff]  ;;  %v1290_v48 = vld [vmem:[%s1785_s1 + $0x10] sm:$0xff] }
  0x15   : > { %v1297_v55 = vld [vmem:[%s1785_s1 + $0x18] sm:$0xff]  ;;  %v1110_v60 = vld [vmem:[%s1786_s2] sm:$0xff]  ;;  %v1499_v62 = vmov 0  }
  0x16   : > { %s1343_s30 = smul.u32 12, %s245_s29  ;;  %v1613_v33 = vand.u32 127, %v280_v31  ;;  %v1119_v61 = vld [vmem:[%s1787_s3] sm:$0xff]  ;;  %1409 = vset.pattern.permute.xlu0 %v1499_v62  ;;  %1410 = vset.pattern.permute.xlu1 %v1499_v62  ;;  %s1431_s29 = scalar_lea.hbm %s1788_s4, 48 }
  0x18   : > { %s248_s7 = scalar_lea.vmem %s1784_s0, %s1343_s30  ;;  %vm302_vm0 = vcmp.lt.s32.totalorder %v1613_v33, 18  ;;  %vm282_vm1 = vcmp.lt.s32.totalorder %v1613_v33, 19  ;;  %vm469_vm2 = vcmp.lt.s32.totalorder %v1613_v33, 17  ;;  %vm565_vm5 = vcmp.lt.s32.totalorder %v1613_v33, 1 }
  0x19   : > { %v1585_v0 = vld [vmem:[%s248_s7] sm:$0xff]  ;;  %v1587_v1 = vld [vmem:[%s248_s7 + $0x8] sm:$0xf]  ;;  %vm741_vm6 = vcmp.lt.s32.totalorder %v1613_v33, 127  ;;  %vm837_vm7 = vcmp.lt.s32.totalorder %v1613_v33, 111  ;;  %vm933_vm8 = vcmp.lt.s32.totalorder %v1613_v33, 110 }
  0x1a   : > { %265 = vst [vmem:[#allocation1] ss:$2 sm:$0xff] %v1585_v0  ;;  %vm1029_vm9 = vcmp.lt.s32.totalorder %v1613_v33, 109  ;;  %s1342_s7 = smul.u32 24, %s241_s6 }
  0x1b   : > { %267 = vst [vmem:[#allocation1 + $0x10] ss:$2 sm:$0xff] %v1587_v1 }
  0x21   : > { %v268_v2 = vld.sshfl [vmem:[#allocation1] sm:$0xff pattern:$0x75316420]  ;;  %v269_v3 = vld.sshfl [vmem:[#allocation1 + $0x8] sm:$0xff pattern:$0x75316420] }
  0x22   : > { %274 = vrot.lane.b32.xlu1 %v268_v2, %s1491_s8  ;;  %287 = vst [vmem:[#allocation1] ss:$2 sm:$0xff] %v1585_v0  ;;  %v270_v4 = vld.sshfl [vmem:[#allocation1 + $0x10] sm:$0xff pattern:$0x75316420] }
  0x23   : > { %289 = vst [vmem:[#allocation1 + $0x10] ss:$2 sm:$0xff] %v1587_v1 }
  0x29   : > { %v291_v5 = vld.sshfl [vmem:[#allocation1 + $0x8] sm:$0xff pattern:$0x75316420]  ;;  %v290_v6 = vld.sshfl [vmem:[#allocation1] sm:$0xff pattern:$0x75316420] }
  0x2a   : > { %278 = vrot.lane.b32.xlu1 %v270_v4, %s1491_s8  ;;  %298 = vrot.lane.b32.xlu0 %v291_v5, %s1492_s9  ;;  %v292_v7 = vld.sshfl [vmem:[#allocation1 + $0x10] sm:$0xff pattern:$0x75316420]  ;;  %454 = vst [vmem:[#allocation1] ss:$2 sm:$0xff] %v1585_v0 }
  0x2b   : > { %456 = vst [vmem:[#allocation1 + $0x10] ss:$2 sm:$0xff] %v1587_v1  ;;  %296 = vrot.lane.b32.xlu2 %v290_v6, %s1492_s9 }
  0x31   : > { %v457_v8 = vld.sshfl [vmem:[#allocation1] sm:$0xff pattern:$0x75316420]  ;;  %v458_v9 = vld.sshfl [vmem:[#allocation1 + $0x8] sm:$0xff pattern:$0x75316420] }
  0x32   : > { %276 = vrot.lane.b32.xlu1 %v269_v3, %s1491_s8  ;;  %300 = vrot.lane.b32.xlu0 %v292_v7, %s1492_s9  ;;  %v459_v10 = vld.sshfl [vmem:[#allocation1 + $0x10] sm:$0xff pattern:$0x75316420]  ;;  %550 = vst [vmem:[#allocation1] ss:$2 sm:$0xff] %v1585_v0  ;;  %v1311_v3 = vld [vmem:[%s1785_s1 + $0x28] sm:$0xff] }
  0x33   : > { %552 = vst [vmem:[#allocation1 + $0x10] ss:$2 sm:$0xff] %v1587_v1  ;;  %463 = vrot.lane.b32.xlu2 %v457_v8, %s1493_s10  ;;  %s1344_s8 = smul.u32 24, %s1481_s18  ;;  %s1135_s18 = scalar_lea.sflag [#allocation3], %s241_s6 }
  0x39   : > { %v554_v11 = vld.sshfl [vmem:[#allocation1 + $0x8] sm:$0xff pattern:$0x75316420]  ;;  %v553_v12 = vld.sshfl [vmem:[#allocation1] sm:$0xff pattern:$0x75316420] }
  0x3a   : > { %v555_v13 = vld.sshfl [vmem:[#allocation1 + $0x10] sm:$0xff pattern:$0x75316420]  ;;  %467 = vrot.lane.b32.xlu0 %v459_v10, %s1493_s10  ;;  %561 = vrot.lane.b32.xlu1 %v554_v11, %s1494_s11  ;;  %648 = vst [vmem:[#allocation1] ss:$2 sm:$0xff] %v1585_v0 }
  0x3b   : > { %650 = vst [vmem:[#allocation1 + $0x10] ss:$2 sm:$0xff] %v1587_v1  ;;  %465 = vrot.lane.b32.xlu2 %v458_v9, %s1493_s10  ;;  %v1318_v11 = vld [vmem:[%s1785_s1 + $0x30] sm:$0xff] }
  0x41   : > { %v1599_v14 = vld.sshfl [vmem:[#allocation1] sm:$0xff pattern:$0x75316420]  ;;  %v1601_v15 = vld.sshfl [vmem:[#allocation1 + $0x8] sm:$0xff pattern:$0x75316420] }
  0x42   : > { %v1603_v16 = vld.sshfl [vmem:[#allocation1 + $0x10] sm:$0xff pattern:$0x75316420]  ;;  %559 = vrot.lane.b32.xlu0 %v553_v12, %s1494_s11  ;;  %726 = vst [vmem:[#allocation1] ss:$2 sm:$0xff] %v1585_v0 }
  0x43   : > { %728 = vst [vmem:[#allocation1 + $0x10] ss:$2 sm:$0xff] %v1587_v1  ;;  %563 = vrot.lane.b32.xlu2 %v555_v13, %s1494_s11  ;;  %s1148_s11 = scalar_lea.hbm %s1788_s4, %s1344_s8 }
  0x49   : > { %v730_v17 = vld.sshfl [vmem:[#allocation1 + $0x8] sm:$0xff pattern:$0x75316420]  ;;  %v729_v18 = vld.sshfl [vmem:[#allocation1] sm:$0xff pattern:$0x75316420] }
  0x4a   : > { %737 = vrot.lane.b32.xlu1 %v730_v17, %s1495_s12  ;;  %735 = vrot.lane.b32.xlu0 %v729_v18, %s1495_s12  ;;  %822 = vst [vmem:[#allocation1] ss:$2 sm:$0xff] %v1585_v0  ;;  %v731_v19 = vld.sshfl [vmem:[#allocation1 + $0x10] sm:$0xff pattern:$0x75316420]  ;;  %v1325_v17 = vld [vmem:[%s1785_s1 + $0x38] sm:$0xff] }
  0x4b   : > { %824 = vst [vmem:[#allocation1 + $0x10] ss:$2 sm:$0xff] %v1587_v1 }
  0x51   : > { %v826_v20 = vld.sshfl [vmem:[#allocation1 + $0x8] sm:$0xff pattern:$0x75316420]  ;;  %v825_v21 = vld.sshfl [vmem:[#allocation1] sm:$0xff pattern:$0x75316420] }
  0x52   : > { %v827_v22 = vld.sshfl [vmem:[#allocation1 + $0x10] sm:$0xff pattern:$0x75316420]  ;;  %739 = vrot.lane.b32.xlu1 %v731_v19, %s1495_s12  ;;  %833 = vrot.lane.b32.xlu0 %v826_v20, %s1496_s13  ;;  %918 = vst [vmem:[#allocation1] ss:$2 sm:$0xff] %v1585_v0  ;;  %s243_s12 = scalar_lea.vmem [#allocation2], %s1342_s7 }
  0x53   : > { %920 = vst [vmem:[#allocation1 + $0x10] ss:$2 sm:$0xff] %v1587_v1  ;;  %831 = vrot.lane.b32.xlu2 %v825_v21, %s1496_s13 }
  0x59   : > { %v922_v23 = vld.sshfl [vmem:[#allocation1 + $0x8] sm:$0xff pattern:$0x75316420]  ;;  %v921_v24 = vld.sshfl [vmem:[#allocation1] sm:$0xff pattern:$0x75316420] }
  0x5a   : > { %v923_v25 = vld.sshfl [vmem:[#allocation1 + $0x10] sm:$0xff pattern:$0x75316420]  ;;  %929 = vrot.lane.b32.xlu0 %v922_v23, %s1497_s14  ;;  %1014 = vst [vmem:[#allocation1] ss:$2 sm:$0xff] %v1585_v0 }
  0x5b   : > { %1016 = vst [vmem:[#allocation1 + $0x10] ss:$2 sm:$0xff] %v1587_v1  ;;  %931 = vrot.lane.b32.xlu1 %v923_v25, %s1497_s14  ;;  %835 = vrot.lane.b32.xlu2 %v827_v22, %s1496_s13  ;;  %v1304_v1 = vld [vmem:[%s1785_s1 + $0x20] sm:$0xff]  ;;  %s1150_s13 = sshll.u32 %s243_s12, 4  ;;  %s1151_s13 = int_to_ptr.vmem [resolvable:$true] %s1150_s13 }
  0x61   : > { %v1017_v26 = vld.sshfl [vmem:[#allocation1] sm:$0xff pattern:$0x75316420]  ;;  %v1018_v28 = vld.sshfl [vmem:[#allocation1 + $0x8] sm:$0xff pattern:$0x75316420] }
  0x62   : > { %v1019_v27 = vld.sshfl [vmem:[#allocation1 + $0x10] sm:$0xff pattern:$0x75316420]  ;;  %1023 = vrot.lane.b32.xlu0 %v1017_v26, %s1498_s21 }
  0x63   : > { %1027 = vrot.lane.b32.xlu1 %v1019_v27, %s1498_s21  ;;  %927 = vrot.lane.b32.xlu2 %v921_v24, %s1497_s14  ;;  %v1332_v24 = vld [vmem:[%s1785_s1 + $0x40] sm:$0xff]  ;;  %s1152_s14 = sshll.u32 %s1148_s11, 4  ;;  %s1153_s14 = int_to_ptr.hbm [resolvable:$true] %s1152_s14 }
  0x6a   : > { %1113 = vperm.xlu0 %1409, %v1110_v60  }
  0x6b   : > { %1025 = vrot.lane.b32.xlu2 %v1018_v28, %s1498_s21  ;;  %1122 = vperm.xlu1 %1410, %v1119_v61   ;;  %s1425_s21 = sshra.s32 %s1153_s14, 4  ;;  %s1426_s21 = int_to_ptr.hbm [resolvable:$true] %s1425_s21 }
  0x6c   : > { %s1427_s22 = scalar_lea.hbm %s1426_s21, 24  ;;  %p1432_p1 = scmp.lt.s32.totalorder %s1426_s21, %s1788_s4 }
  0x6d   : > { %p1428_p12 = scmp.ne.s32.totalorder %s1426_s21, %s1427_s22  ;;  %p1433_p2 = scmp.lt.s32.totalorder %s1431_s29, %s1427_s22 }
  0x6f   : > { %p1429_p13 = pnand %p1428_p12, %p1565_p4  ;;  %p1434_p3 = por %p1433_p2, %p1432_p1 }
  0x71   : > { %p1430_p0 = pneg %p1429_p13 }
  0x73   : > { %p1435_p5 = pnand %p1434_p3, %p1430_p0 }
  0x85   : > { %v297_v29 = vpop.permute.xlu2 %296 }
  0x8d   : > { %v464_v30 = vpop.permute.xlu2 %463 }
  0x94   : > { %v275_v32 = vpop.permute.xlu1 %274 }
  0x95   : > { %v466_v34 = vpop.permute.xlu2 %465 }
  0x96   : > { %v471_v41 = vsel %vm469_vm2, %v464_v30, %v466_v34 }
  0x9c   : > { %v279_v35 = vpop.permute.xlu1 %278  ;;  %v299_v36 = vpop.permute.xlu0 %298 }
  0x9d   : > { %v304_v39 = vsel %vm302_vm0, %v297_v29, %v299_v36  ;;  %v285_v40 = vsel %vm282_vm1, %v279_v35, %v275_v32  ;;  %v564_v49 = vpop.permute.xlu2 %563 }
  0x9e   : > { %1280 = vmatpush.msk.msra.mxu1 %vm312_vm3, %v304_v39  ;;  %1284 = vmatpush.msk.msra.mxu3 %vm312_vm3, %v285_v40 }
  0x9f   : > { %1285 = vmatmul.msk.f32.vlgmr.msra.gmra.mxu3 %vm308_vm4, %v286_v37  ;;  %1281 = vmatmul.msk.f32.vlgmr.msra.gmra.mxu1 %vm308_vm4, %v1277_v38 }
  0xa0   : > { %1293 = vmatpush.msk.msrb.mxu3 %vm312_vm3, %v471_v41 }
  0xa4   : > { %v277_v42 = vpop.permute.xlu1 %276  ;;  %v301_v43 = vpop.permute.xlu0 %300 }
  0xa5   : > { %v305_v44 = vsel %vm302_vm0, %v301_v43, %v297_v29  ;;  %v303_v45 = vsel %vm302_vm0, %v299_v36, %v301_v43  ;;  %v283_v46 = vsel %vm282_vm1, %v277_v42, %v279_v35  ;;  %v284_v47 = vsel %vm282_vm1, %v275_v32, %v277_v42 }
  0xa6   : > { %1278 = vmatpush.msk.msra.mxu0 %vm312_vm3, %v305_v44  ;;  %1282 = vmatpush.msk.msra.mxu2 %vm312_vm3, %v303_v45 }
  0xa7   : > { %1288 = vmatpush.msk.msrb.mxu1 %vm312_vm3, %v283_v46  ;;  %1279 = vmatmul.msk.f32.vlgmr.msra.gmra.mxu0 %vm308_vm4, %v1277_v38 }
  0xa8   : > { %1283 = vmatmul.msk.f32.vlgmr.msra.gmra.mxu2 %vm308_vm4, %v1277_v38  ;;  %1286 = vmatpush.msk.msrb.mxu0 %vm312_vm3, %v284_v47 }
  0xa9   : > { %1294 = vmatmul.msk.f32.vlgmr.msrb.gmra.mxu3 %vm308_vm4, %v1290_v48  ;;  %1289 = vmatmul.msk.f32.vlgmr.msrb.gmra.mxu1 %vm308_vm4, %v286_v37 }
  0xac   : > { %v468_v50 = vpop.permute.xlu0 %467  ;;  %v562_v51 = vpop.permute.xlu1 %561 }
  0xad   : > { %v470_v52 = vsel %vm469_vm2, %v466_v34, %v468_v50  ;;  %v472_v53 = vsel %vm469_vm2, %v468_v50, %v464_v30  ;;  %v566_v54 = vsel %vm565_vm5, %v562_v51, %v564_v49  ;;  %v832_v59 = vpop.permute.xlu2 %831 }
  0xae   : > { %1291 = vmatpush.msk.msrb.mxu2 %vm312_vm3, %v472_v53  ;;  %1295 = vmatpush.msk.msra.mxu0 %vm312_vm3, %v470_v52 }
  0xaf   : > { %1287 = vmatmul.msk.f32.vlgmr.msrb.gmra.mxu0 %vm308_vm4, %v286_v37  ;;  %1302 = vmatpush.msk.msra.mxu3 %vm312_vm3, %v566_v54 }
  0xb0   : > { %1292 = vmatmul.msk.f32.vlgmr.msrb.gmra.mxu2 %vm308_vm4, %v1290_v48  ;;  %1305 = vmatpush.msk.msrb.mxu0 %vm312_vm3, %v1599_v14 }
  0xb1   : > { %1303 = vmatmul.msk.f32.vlgmr.msra.gmra.mxu3 %vm308_vm4, %v1297_v55 }
  0xb4   : > { %v560_v56 = vpop.permute.xlu0 %559 }
  0xb5   : > { %v567_v57 = vsel %vm565_vm5, %v560_v56, %v562_v51  ;;  %v568_v58 = vsel %vm565_vm5, %v564_v49, %v560_v56  ;;  %v836_v4 = vpop.permute.xlu2 %835 }
  0xb6   : > { %1298 = vmatpush.msk.msra.mxu1 %vm312_vm3, %v568_v58  ;;  %1300 = vmatpush.msk.msra.mxu2 %vm312_vm3, %v567_v57  ;;  %v840_v13 = vsel %vm837_vm7, %v836_v4, %v832_v59 }
  0xb7   : > { %1296 = vmatmul.msk.f32.vlgmr.msra.gmra.mxu0 %vm308_vm4, %v1290_v48  ;;  %1299 = vmatmul.msk.f32.vlgmr.msra.gmra.mxu1 %vm308_vm4, %v1297_v55 }
  0xb8   : > { %1301 = vmatmul.msk.f32.vlgmr.msra.gmra.mxu2 %vm308_vm4, %v1297_v55  ;;  %1307 = vmatpush.msk.msrb.mxu1 %vm312_vm3, %v1601_v15 }
  0xb9   : > { %1309 = vmatpush.msk.msrb.mxu2 %vm312_vm3, %v1603_v16 }
  0xbc   : > { %v738_v63 = vpop.permute.xlu1 %737  ;;  %v736_v0 = vpop.permute.xlu0 %735 }
  0xbd   : > { %v743_v2 = vsel %vm741_vm6, %v736_v0, %v738_v63  ;;  %v928_v12 = vpop.permute.xlu2 %927 }
  0xbe   : > { %1312 = vmatpush.msk.msrb.mxu3 %vm312_vm3, %v743_v2 }
  0xbf   : > { %1306 = vmatmul.msk.f32.vlgmr.msrb.gmra.mxu0 %vm308_vm4, %v1304_v1  ;;  %1308 = vmatmul.msk.f32.vlgmr.msrb.gmra.mxu1 %vm308_vm4, %v1304_v1 }
  0xc0   : > { %1310 = vmatmul.msk.f32.vlgmr.msrb.gmra.mxu2 %vm308_vm4, %v1304_v1  ;;  %1313 = vmatmul.msk.f32.vlgmr.msrb.gmra.mxu3 %vm308_vm4, %v1311_v3 }
  0xc4   : > { %v740_v5 = vpop.permute.xlu1 %739  ;;  %v834_v6 = vpop.permute.xlu0 %833 }
  0xc5   : > { %v742_v7 = vsel %vm741_vm6, %v738_v63, %v740_v5  ;;  %v744_v8 = vsel %vm741_vm6, %v740_v5, %v736_v0  ;;  %v838_v9 = vsel %vm837_vm7, %v834_v6, %v836_v4  ;;  %v839_v10 = vsel %vm837_vm7, %v832_v59, %v834_v6  ;;  %v1026_v20 = vpop.permute.xlu2 %1025 }
  0xc6   : > { %1314 = vmatpush.msk.msra.mxu0 %vm312_vm3, %v742_v7  ;;  %1316 = vmatpush.msk.msra.mxu1 %vm312_vm3, %v744_v8 }
  0xc7   : > { %1319 = vmatpush.msk.msra.mxu2 %vm312_vm3, %v839_v10  ;;  %1321 = vmatpush.msk.msra.mxu3 %vm312_vm3, %v838_v9 }
  0xc8   : > { %1315 = vmatmul.msk.f32.vlgmr.msra.gmra.mxu0 %vm308_vm4, %v1311_v3  ;;  %1317 = vmatmul.msk.f32.vlgmr.msra.gmra.mxu1 %vm308_vm4, %v1311_v3 }
  0xc9   : > { %1320 = vmatmul.msk.f32.vlgmr.msra.gmra.mxu2 %vm308_vm4, %v1318_v11  ;;  %1322 = vmatmul.msk.f32.vlgmr.msra.gmra.mxu3 %vm308_vm4, %v1318_v11 }
  0xca   : > { %1323 = vmatpush.msk.msrb.mxu0 %vm312_vm3, %v840_v13 }
  0xcc   : > { %v930_v14 = vpop.permute.xlu0 %929 }
  0xcd   : > { %v932_v15 = vpop.permute.xlu1 %931  ;;  %v935_v16 = vsel %vm933_vm8, %v928_v12, %v930_v14 }
  0xce   : > { %v934_v18 = vsel %vm933_vm8, %v930_v14, %v932_v15  ;;  %v936_v19 = vsel %vm933_vm8, %v932_v15, %v928_v12  ;;  %1326 = vmatpush.msk.msrb.mxu1 %vm312_vm3, %v935_v16 }
  0xcf   : > { %1328 = vmatpush.msk.msrb.mxu2 %vm312_vm3, %v934_v18  ;;  %1330 = vmatpush.msk.msrb.mxu3 %vm312_vm3, %v936_v19 }
  0xd0   : > { %1324 = vmatmul.msk.f32.vlgmr.msrb.gmra.mxu0 %vm308_vm4, %v1318_v11  ;;  %1327 = vmatmul.msk.f32.vlgmr.msrb.gmra.mxu1 %vm308_vm4, %v1325_v17 }
  0xd1   : > { %1329 = vmatmul.msk.f32.vlgmr.msrb.gmra.mxu2 %vm308_vm4, %v1325_v17  ;;  %1331 = vmatmul.msk.f32.vlgmr.msrb.gmra.mxu3 %vm308_vm4, %v1325_v17 }
  0xd4   : > { %v1024_v21 = vpop.permute.xlu0 %1023 }
  0xd5   : > { %v1028_v22 = vpop.permute.xlu1 %1027  ;;  %v1031_v23 = vsel %vm1029_vm9, %v1024_v21, %v1026_v20 }
  0xd6   : > { %v1030_v25 = vsel %vm1029_vm9, %v1026_v20, %v1028_v22  ;;  %v1032_v26 = vsel %vm1029_vm9, %v1028_v22, %v1024_v21  ;;  %1333 = vmatpush.msk.msra.mxu0 %vm312_vm3, %v1031_v23 }
  0xd7   : > { %1335 = vmatpush.msk.msra.mxu1 %vm312_vm3, %v1030_v25  ;;  %1337 = vmatpush.msk.msra.mxu2 %vm312_vm3, %v1032_v26 }
  0xd8   : > { %1334 = vmatmul.msk.f32.vlgmr.msra.gmra.mxu0 %vm308_vm4, %v1332_v24  ;;  %1336 = vmatmul.msk.f32.vlgmr.msra.gmra.mxu1 %vm308_vm4, %v1332_v24 }
  0xd9   : > { %1338 = vmatmul.msk.f32.vlgmr.msra.gmra.mxu2 %vm308_vm4, %v1332_v24 }
  0xdc   : > { %v1114_v3 = vpop.permute.xlu0 %1113 }
  0xdd   : > { %v1123_v10 = vpop.permute.xlu1 %1122 }
 0x11c   : > { %v359_v27 = vpop.f32.mrf.mxu1 }
 0x122   : > { %v411_v29 = vpop.f32.mrf.mxu3 }
 0x124   : > { %v339_v28 = vpop.f32.mrf.mxu0 }
 0x125   : > { %v412_v42 = vadd.f32 %v411_v29, %v339_v28 }
 0x126   : > { %v451_v32 = vpop.f32.mrf.mxu1 }
 0x12b   : > { %v379_v30 = vpop.f32.mrf.mxu2 }
 0x12c   : > { %v431_v31 = vpop.f32.mrf.mxu0  ;;  %v524_v33 = vpop.f32.mrf.mxu3  ;;  %v452_v50 = vadd.f32 %v451_v32, %v379_v30 }
 0x12d   : > { %v432_v44 = vadd.f32 %v431_v31, %v359_v27 }
 0x12f   : > { %v548_v48 = vadd.f32 %v524_v33, %v432_v44 }
 0x133   : > { %v504_v34 = vpop.f32.mrf.mxu2 }
 0x134   : > { %v544_v35 = vpop.f32.mrf.mxu0  ;;  %v600_v36 = vpop.f32.mrf.mxu1  ;;  %v547_v47 = vadd.f32 %v504_v34, %v412_v42 }
 0x135   : > { %v640_v37 = vpop.f32.mrf.mxu3  ;;  %v549_v54 = vadd.f32 %v544_v35, %v452_v50 }
 0x136   : > { %v643_v49 = vadd.f32 %v600_v36, %v547_v47 }
 0x137   : > { %v645_v61 = vadd.f32 %v640_v37, %v549_v54 }
 0x13b   : > { %v620_v38 = vpop.f32.mrf.mxu2 }
 0x13c   : > { %v680_v39 = vpop.f32.mrf.mxu0  ;;  %v700_v40 = vpop.f32.mrf.mxu1  ;;  %v644_v51 = vadd.f32 %v620_v38, %v548_v48 }
 0x13d   : > { %v723_v52 = vadd.f32 %v680_v39, %v643_v49 }
 0x13e   : > { %v724_v59 = vadd.f32 %v700_v40, %v644_v51 }
 0x143   : > { %v720_v41 = vpop.f32.mrf.mxu2  ;;  %v776_v43 = vpop.f32.mrf.mxu3 }
 0x144   : > { %v819_v57 = vadd.f32 %v776_v43, %v723_v52  ;;  %v725_v63 = vadd.f32 %v720_v41, %v645_v61 }
 0x145   : > { %v796_v45 = vpop.f32.mrf.mxu0  ;;  %v816_v46 = vpop.f32.mrf.mxu1 }
 0x146   : > { %v820_v62 = vadd.f32 %v796_v45, %v724_v59  ;;  %v821_v8 = vadd.f32 %v816_v46, %v725_v63 }
 0x14c   : > { %v872_v53 = vpop.f32.mrf.mxu2  ;;  %v892_v58 = vpop.f32.mrf.mxu3 }
 0x14d   : > { %v912_v55 = vpop.f32.mrf.mxu0  ;;  %v968_v56 = vpop.f32.mrf.mxu1  ;;  %v915_v60 = vadd.f32 %v872_v53, %v819_v57  ;;  %v916_v0 = vadd.f32 %v892_v58, %v820_v62 }
 0x14e   : > { %v917_v13 = vadd.f32 %v912_v55, %v821_v8 }
 0x14f   : > { %v1011_v1 = vadd.f32 %v968_v56, %v915_v60 }
 0x154   : > { %v988_v2 = vpop.f32.mrf.mxu2  ;;  %v1008_v11 = vpop.f32.mrf.mxu3 }
 0x155   : > { %v1012_v4 = vadd.f32 %v988_v2, %v916_v0  ;;  %v1064_v5 = vpop.f32.mrf.mxu0  ;;  %v1084_v6 = vpop.f32.mrf.mxu1  ;;  %v1013_v16 = vadd.f32 %v1008_v11, %v917_v13 }
 0x156   : > { %v1107_v7 = vadd.f32 %v1064_v5, %v1011_v1 }
 0x157   : > { %v1108_v9 = vadd.f32 %v1084_v6, %v1012_v4 }
 0x158   : > { %v1116_v12 = vmul.f32 %v1114_v3, %v1107_v7 }
 0x159   : > { %v1117_v14 = vmul.f32 %v1114_v3, %v1108_v9 }
 0x15a   : > { %v1125_v15 = vadd.f32 %v1123_v10, %v1116_v12 }
 0x15b   : > { %v1126_v17 = vadd.f32 %v1123_v10, %v1117_v14 }
 0x15c   : > { %v1128_v18 = vmax.f32 %v1125_v15, 0.0  ;;  %v1104_v19 = vpop.f32.mrf.mxu2 }
 0x15d   : > { %v1129_v20 = vmax.f32 %v1126_v17, 0.0  ;;  %v1109_v21 = vadd.f32 %v1104_v19, %v1013_v16 }
 0x15e   : > { %1131 = vst [vmem:[%s243_s12] sm:$0xff] %v1128_v18 }
 0x15f   : > { %1132 = vst [vmem:[%s243_s12 + $0x8] sm:$0xff] %v1129_v20  ;;  %v1118_v22 = vmul.f32 %v1114_v3, %v1109_v21 }
 0x161   : > { %v1127_v23 = vadd.f32 %v1123_v10, %v1118_v22 }
 0x163   : > { %v1130_v24 = vmax.f32 %v1127_v23, 0.0 }
 0x165   : > { %1133 = vst [vmem:[%s243_s12 + $0x10] sm:$0xff] %v1130_v24 }
 0x166   : > { %1438 = shalt.err (!%p1435_p5)
}
 0x167   : > { %1345 = dma.vmem_to_hbm [thread:$0]  (%p1565_p4), %s1151_s13, 384, %s1153_s14, %s1135_s18  }
 0x168 PF: > { %p1351_p6 = scmp.ge.s32.totalorder %s1489_s20, 2  ;;  %s1164_s6 = sand.u32 1, %s1469_s15  }
 0x169   : > { %s1165_s7 = scalar_lea.sflag [#allocation3], %s1164_s6 }
 0x16a   : > { %p1348_p7 = pnand %p1351_p6, %p1572_p8 }
 0x16c   : > { %p1349_p9 = pneg %p1348_p7 }
 0x16e   : > { %1464 = dma.done.wait (%p1349_p9), %s1165_s7, 384  }
 0x16f   : > { %1466 = vsyncadd (%p1349_p9), %s1165_s7, 4294966912  ;;  %s17_s20 = sadd.s32 1, %s1489_s20   ;;  %s1791_s15 = smov %s1473_s16 }
 0x170   : > { %p14_p10 = scmp.ge.s32.totalorder %s17_s20, 4   ;;  %s1792_s16 = smov %s1477_s17 }
 0x171   : > { %s1793_s17 = smov %s1578_s28  ;;  %s1794_s18 = smov %s1485_s19 }
 0x172   : > { %s1795_s19 = smov %s1797_s23  ;;  %16 = sbr.rel (!%p14_p10) target bundleno = 4 (0x4), region = 97 }
 0x177   :  { %1171 = vsyncpa [#allocation3], 1 }
 0x178   :  { %1173 = vsyncpa [#allocation3 + $0x1], 1 }

// kernel: tpu_custom_call.1
= control target key start
LH: loop header
LB: loop body
LE: loop exit
PB: predicated region body
PF: predicated region fallthrough
CT: control target
= control target key end

     0   :  { %9 = vsyncpa [#allocation3], 0  ;;  %s1784_s0 = inlined_call_operand.vmem [shape: f32[2,4,384], index: 0, kind: input, shape index: {}]   ;;  %s1785_s1 = inlined_call_operand.vmem [shape: f32[9,8,4], index: 1, kind: input, shape index: {}]   ;;  %s1786_s2 = inlined_call_operand.vmem [shape: f32[8,1], index: 2, kind: input, shape index: {}]   ;;  %s1787_s3 = inlined_call_operand.vmem [shape: f32[8,1], index: 3, kind: input, shape index: {}]   ;;  %s1788_s4 = inlined_call_operand.hbm [shape: f32[2,8,384], index: 4, kind: output, shape index: {}]  }
   0x1   :  { %11 = vsyncpa [#allocation3 + $0x1], 0  ;;  %s1525_s15 = smov 0   ;;  %s1527_s16 = smov 0  }
   0x2   :  { %s1529_s17 = smov 0   ;;  %s1531_s18 = smov 0  }
   0x3   :  { %s1533_s19 = smov 0   ;;  %s1535_s20 = smov 0  }
   0x4 LB: > { %s1268_s21 = sadd.s32 4294967295, %s1489_s20   ;;  %s1269_s22 = sadd.s32 4294967294, %s1489_s20   ;;  %s1489_s20 = sphi %s1535_s20, %s17_s20   ;;  %s1485_s19 = sphi %s1533_s19, %s1795_s19   ;;  %s1481_s18 = sphi %s1531_s18, %s1794_s18   ;;  %s1477_s17 = sphi %s1529_s17, %s1793_s17   ;;  %s1473_s16 = sphi %s1527_s16, %s1792_s16   ;;  %s1469_s15 = sphi %s1525_s15, %s1791_s15  }
   0x5   : > { %s29_s23 = sadd.s32 1, %s1485_s19  ;;  %s142_s24 = sadd.s32 1, %s1477_s17 }
   0x6   : > { %p31_p0 = scmp.ge.s32.totalorder %s29_s23, 2  ;;  %p152_p1 = scmp.ne.s32.totalorder %s1477_s17, %s1473_s16 }
   0x7   : > { %p153_p2 = scmp.eq.s32.totalorder %s1268_s21, 1  ;;  %p158_p3 = scmp.ne.s32.totalorder %s1473_s16, %s1469_s15 }
   0x8   : > { %s1797_s23 = smov (%p31_p0, %s29_s23), 0  ;;  %p159_p5 = scmp.eq.s32.totalorder %s1269_s22, 1 }
   0x9   : > { %p1565_p4 = por %p153_p2, %p152_p1  ;;  %s137_s26 = ssub.s32 %s1485_s19, %s1797_s23 }
   0xa   : > { %p1275_p6 = scmp.ge.s32.totalorder %s1489_s20, 1  ;;  %p140_p7 = scmp.eq.s32.totalorder %s137_s26, 0 }
   0xb   : > { %p1572_p8 = por %p159_p5, %p158_p3  ;;  %p206_p9 = scmp.lt.s32.totalorder %s1489_s20, 3 }
   0xc   : > { %s1578_s28 = scalar_select %p140_p7, %s1477_s17, %s142_s24  }
   0xd   : > { %p207_p10 = pnand %p1275_p6, %p206_p9 }
   0xe   : > { %p244_p11 = scmp.lt.s32.totalorder (!%p207_p10), %s1481_s18, 1  ;;  %s1491_s8 = smov (!%p207_p10), 19  }
   0xf   : > { %210 = sbr.rel (%p207_p10) target bundleno = 360 (0x168), region = 36  ;;  %s1492_s9 = smov (!%p207_p10), 18  }
  0x10   : > { %s1493_s10 = smov (!%p207_p10), 17   ;;  %s1494_s11 = smov (!%p207_p10), 1  }
  0x11   : > { %s1495_s12 = smov (!%p207_p10), 127   ;;  %s1496_s13 = smov (!%p207_p10), 111  }
  0x12   : > { %s1497_s14 = smov (!%p207_p10), 110   ;;  %s1498_s21 = smov (!%p207_p10), 109  }
  0x13   : > { %s241_s6 = sand.u32 (!%p207_p10), 1, %s1473_s16  }
  0x14   : > { %s245_s29 = scalar_select %p244_p11, %s1481_s18, 1  ;;  %v280_v31 = vlaneseq  ;;  %vm312_vm3 = vcmask 1043456   ;;  %v286_v37 = vld [vmem:[%s1785_s1] sm:$0xff]  ;;  %vm308_vm4 = vcmask 31744   ;;  %v1277_v38 = vld [vmem:[%s1785_s1 + $0x8] sm:$0xff]  ;;  %v1290_v48 = vld [vmem:[%s1785_s1 + $0x10] sm:$0xff] }
  0x15   : > { %v1297_v55 = vld [vmem:[%s1785_s1 + $0x18] sm:$0xff]  ;;  %v1110_v60 = vld [vmem:[%s1786_s2] sm:$0xff]  ;;  %v1499_v62 = vmov 0  }
  0x16   : > { %s1343_s30 = smul.u32 12, %s245_s29  ;;  %v1613_v33 = vand.u32 127, %v280_v31  ;;  %v1119_v61 = vld [vmem:[%s1787_s3] sm:$0xff]  ;;  %1409 = vset.pattern.permute.xlu0 %v1499_v62  ;;  %1410 = vset.pattern.permute.xlu1 %v1499_v62  ;;  %s1431_s29 = scalar_lea.hbm %s1788_s4, 48 }
  0x18   : > { %s248_s7 = scalar_lea.vmem %s1784_s0, %s1343_s30  ;;  %vm302_vm0 = vcmp.lt.s32.totalorder %v1613_v33, 18  ;;  %vm282_vm1 = vcmp.lt.s32.totalorder %v1613_v33, 19  ;;  %vm469_vm2 = vcmp.lt.s32.totalorder %v1613_v33, 17  ;;  %vm565_vm5 = vcmp.lt.s32.totalorder %v1613_v33, 1 }
  0x19   : > { %v1585_v0 = vld [vmem:[%s248_s7] sm:$0xff]  ;;  %v1587_v1 = vld [vmem:[%s248_s7 + $0x8] sm:$0xf]  ;;  %vm741_vm6 = vcmp.lt.s32.totalorder %v1613_v33, 127  ;;  %vm837_vm7 = vcmp.lt.s32.totalorder %v1613_v33, 111  ;;  %vm933_vm8 = vcmp.lt.s32.totalorder %v1613_v33, 110 }
  0x1a   : > { %265 = vst [vmem:[#allocation1] ss:$2 sm:$0xff] %v1585_v0  ;;  %vm1029_vm9 = vcmp.lt.s32.totalorder %v1613_v33, 109  ;;  %s1342_s7 = smul.u32 24, %s241_s6 }
  0x1b   : > { %267 = vst [vmem:[#allocation1 + $0x10] ss:$2 sm:$0xff] %v1587_v1 }
  0x21   : > { %v268_v2 = vld.sshfl [vmem:[#allocation1] sm:$0xff pattern:$0x75316420]  ;;  %v269_v3 = vld.sshfl [vmem:[#allocation1 + $0x8] sm:$0xff pattern:$0x75316420] }
  0x22   : > { %274 = vrot.lane.b32.xlu1 %v268_v2, %s1491_s8  ;;  %287 = vst [vmem:[#allocation1] ss:$2 sm:$0xff] %v1585_v0  ;;  %v270_v4 = vld.sshfl [vmem:[#allocation1 + $0x10] sm:$0xff pattern:$0x75316420] }
  0x23   : > { %289 = vst [vmem:[#allocation1 + $0x10] ss:$2 sm:$0xff] %v1587_v1 }
  0x29   : > { %v291_v5 = vld.sshfl [vmem:[#allocation1 + $0x8] sm:$0xff pattern:$0x75316420]  ;;  %v290_v6 = vld.sshfl [vmem:[#allocation1] sm:$0xff pattern:$0x75316420] }
  0x2a   : > { %278 = vrot.lane.b32.xlu1 %v270_v4, %s1491_s8  ;;  %298 = vrot.lane.b32.xlu0 %v291_v5, %s1492_s9  ;;  %v292_v7 = vld.sshfl [vmem:[#allocation1 + $0x10] sm:$0xff pattern:$0x75316420]  ;;  %454 = vst [vmem:[#allocation1] ss:$2 sm:$0xff] %v1585_v0 }
  0x2b   : > { %456 = vst [vmem:[#allocation1 + $0x10] ss:$2 sm:$0xff] %v1587_v1  ;;  %296 = vrot.lane.b32.xlu2 %v290_v6, %s1492_s9 }
  0x31   : > { %v457_v8 = vld.sshfl [vmem:[#allocation1] sm:$0xff pattern:$0x75316420]  ;;  %v458_v9 = vld.sshfl [vmem:[#allocation1 + $0x8] sm:$0xff pattern:$0x75316420] }
  0x32   : > { %276 = vrot.lane.b32.xlu1 %v269_v3, %s1491_s8  ;;  %300 = vrot.lane.b32.xlu0 %v292_v7, %s1492_s9  ;;  %v459_v10 = vld.sshfl [vmem:[#allocation1 + $0x10] sm:$0xff pattern:$0x75316420]  ;;  %550 = vst [vmem:[#allocation1] ss:$2 sm:$0xff] %v1585_v0  ;;  %v1311_v3 = vld [vmem:[%s1785_s1 + $0x28] sm:$0xff] }
  0x33   : > { %552 = vst [vmem:[#allocation1 + $0x10] ss:$2 sm:$0xff] %v1587_v1  ;;  %463 = vrot.lane.b32.xlu2 %v457_v8, %s1493_s10  ;;  %s1344_s8 = smul.u32 24, %s1481_s18  ;;  %s1135_s18 = scalar_lea.sflag [#allocation3], %s241_s6 }
  0x39   : > { %v554_v11 = vld.sshfl [vmem:[#allocation1 + $0x8] sm:$0xff pattern:$0x75316420]  ;;  %v553_v12 = vld.sshfl [vmem:[#allocation1] sm:$0xff pattern:$0x75316420] }
  0x3a   : > { %v555_v13 = vld.sshfl [vmem:[#allocation1 + $0x10] sm:$0xff pattern:$0x75316420]  ;;  %467 = vrot.lane.b32.xlu0 %v459_v10, %s1493_s10  ;;  %561 = vrot.lane.b32.xlu1 %v554_v11, %s1494_s11  ;;  %648 = vst [vmem:[#allocation1] ss:$2 sm:$0xff] %v1585_v0 }
  0x3b   : > { %650 = vst [vmem:[#allocation1 + $0x10] ss:$2 sm:$0xff] %v1587_v1  ;;  %465 = vrot.lane.b32.xlu2 %v458_v9, %s1493_s10  ;;  %v1318_v11 = vld [vmem:[%s1785_s1 + $0x30] sm:$0xff] }
  0x41   : > { %v1599_v14 = vld.sshfl [vmem:[#allocation1] sm:$0xff pattern:$0x75316420]  ;;  %v1601_v15 = vld.sshfl [vmem:[#allocation1 + $0x8] sm:$0xff pattern:$0x75316420] }
  0x42   : > { %v1603_v16 = vld.sshfl [vmem:[#allocation1 + $0x10] sm:$0xff pattern:$0x75316420]  ;;  %559 = vrot.lane.b32.xlu0 %v553_v12, %s1494_s11  ;;  %726 = vst [vmem:[#allocation1] ss:$2 sm:$0xff] %v1585_v0 }
  0x43   : > { %728 = vst [vmem:[#allocation1 + $0x10] ss:$2 sm:$0xff] %v1587_v1  ;;  %563 = vrot.lane.b32.xlu2 %v555_v13, %s1494_s11  ;;  %s1148_s11 = scalar_lea.hbm %s1788_s4, %s1344_s8 }
  0x49   : > { %v730_v17 = vld.sshfl [vmem:[#allocation1 + $0x8] sm:$0xff pattern:$0x75316420]  ;;  %v729_v18 = vld.sshfl [vmem:[#allocation1] sm:$0xff pattern:$0x75316420] }
  0x4a   : > { %737 = vrot.lane.b32.xlu1 %v730_v17, %s1495_s12  ;;  %735 = vrot.lane.b32.xlu0 %v729_v18, %s1495_s12  ;;  %822 = vst [vmem:[#allocation1] ss:$2 sm:$0xff] %v1585_v0  ;;  %v731_v19 = vld.sshfl [vmem:[#allocation1 + $0x10] sm:$0xff pattern:$0x75316420]  ;;  %v1325_v17 = vld [vmem:[%s1785_s1 + $0x38] sm:$0xff] }
  0x4b   : > { %824 = vst [vmem:[#allocation1 + $0x10] ss:$2 sm:$0xff] %v1587_v1 }
  0x51   : > { %v826_v20 = vld.sshfl [vmem:[#allocation1 + $0x8] sm:$0xff pattern:$0x75316420]  ;;  %v825_v21 = vld.sshfl [vmem:[#allocation1] sm:$0xff pattern:$0x75316420] }
  0x52   : > { %v827_v22 = vld.sshfl [vmem:[#allocation1 + $0x10] sm:$0xff pattern:$0x75316420]  ;;  %739 = vrot.lane.b32.xlu1 %v731_v19, %s1495_s12  ;;  %833 = vrot.lane.b32.xlu0 %v826_v20, %s1496_s13  ;;  %918 = vst [vmem:[#allocation1] ss:$2 sm:$0xff] %v1585_v0  ;;  %s243_s12 = scalar_lea.vmem [#allocation2], %s1342_s7 }
  0x53   : > { %920 = vst [vmem:[#allocation1 + $0x10] ss:$2 sm:$0xff] %v1587_v1  ;;  %831 = vrot.lane.b32.xlu2 %v825_v21, %s1496_s13 }
  0x59   : > { %v922_v23 = vld.sshfl [vmem:[#allocation1 + $0x8] sm:$0xff pattern:$0x75316420]  ;;  %v921_v24 = vld.sshfl [vmem:[#allocation1] sm:$0xff pattern:$0x75316420] }
  0x5a   : > { %v923_v25 = vld.sshfl [vmem:[#allocation1 + $0x10] sm:$0xff pattern:$0x75316420]  ;;  %929 = vrot.lane.b32.xlu0 %v922_v23, %s1497_s14  ;;  %1014 = vst [vmem:[#allocation1] ss:$2 sm:$0xff] %v1585_v0 }
  0x5b   : > { %1016 = vst [vmem:[#allocation1 + $0x10] ss:$2 sm:$0xff] %v1587_v1  ;;  %931 = vrot.lane.b32.xlu1 %v923_v25, %s1497_s14  ;;  %835 = vrot.lane.b32.xlu2 %v827_v22, %s1496_s13  ;;  %v1304_v1 = vld [vmem:[%s1785_s1 + $0x20] sm:$0xff]  ;;  %s1150_s13 = sshll.u32 %s243_s12, 4  ;;  %s1151_s13 = int_to_ptr.vmem [resolvable:$true] %s1150_s13 }
  0x61   : > { %v1017_v26 = vld.sshfl [vmem:[#allocation1] sm:$0xff pattern:$0x75316420]  ;;  %v1018_v28 = vld.sshfl [vmem:[#allocation1 + $0x8] sm:$0xff pattern:$0x75316420] }
  0x62   : > { %v1019_v27 = vld.sshfl [vmem:[#allocation1 + $0x10] sm:$0xff pattern:$0x75316420]  ;;  %1023 = vrot.lane.b32.xlu0 %v1017_v26, %s1498_s21 }
  0x63   : > { %1027 = vrot.lane.b32.xlu1 %v1019_v27, %s1498_s21  ;;  %927 = vrot.lane.b32.xlu2 %v921_v24, %s1497_s14  ;;  %v1332_v24 = vld [vmem:[%s1785_s1 + $0x40] sm:$0xff]  ;;  %s1152_s14 = sshll.u32 %s1148_s11, 4  ;;  %s1153_s14 = int_to_ptr.hbm [resolvable:$true] %s1152_s14 }
  0x6a   : > { %1113 = vperm.xlu0 %1409, %v1110_v60  }
  0x6b   : > { %1025 = vrot.lane.b32.xlu2 %v1018_v28, %s1498_s21  ;;  %1122 = vperm.xlu1 %1410, %v1119_v61   ;;  %s1425_s21 = sshra.s32 %s1153_s14, 4  ;;  %s1426_s21 = int_to_ptr.hbm [resolvable:$true] %s1425_s21 }
  0x6c   : > { %s1427_s22 = scalar_lea.hbm %s1426_s21, 24  ;;  %p1432_p1 = scmp.lt.s32.totalorder %s1426_s21, %s1788_s4 }
  0x6d   : > { %p1428_p12 = scmp.ne.s32.totalorder %s1426_s21, %s1427_s22  ;;  %p1433_p2 = scmp.lt.s32.totalorder %s1431_s29, %s1427_s22 }
  0x6f   : > { %p1429_p13 = pnand %p1428_p12, %p1565_p4  ;;  %p1434_p3 = por %p1433_p2, %p1432_p1 }
  0x71   : > { %p1430_p0 = pneg %p1429_p13 }
  0x73   : > { %p1435_p5 = pnand %p1434_p3, %p1430_p0 }
  0x85   : > { %v297_v29 = vpop.permute.xlu2 %296 }
  0x8d   : > { %v464_v30 = vpop.permute.xlu2 %463 }
  0x94   : > { %v275_v32 = vpop.permute.xlu1 %274 }
  0x95   : > { %v466_v34 = vpop.permute.xlu2 %465 }
  0x96   : > { %v471_v41 = vsel %vm469_vm2, %v464_v30, %v466_v34 }
  0x9c   : > { %v279_v35 = vpop.permute.xlu1 %278  ;;  %v299_v36 = vpop.permute.xlu0 %298 }
  0x9d   : > { %v304_v39 = vsel %vm302_vm0, %v297_v29, %v299_v36  ;;  %v285_v40 = vsel %vm282_vm1, %v279_v35, %v275_v32  ;;  %v564_v49 = vpop.permute.xlu2 %563 }
  0x9e   : > { %1280 = vmatpush.msk.msra.mxu1 %vm312_vm3, %v304_v39  ;;  %1284 = vmatpush.msk.msra.mxu3 %vm312_vm3, %v285_v40 }
  0x9f   : > { %1285 = vmatmul.msk.f32.vlgmr.msra.gmra.mxu3 %vm308_vm4, %v286_v37  ;;  %1281 = vmatmul.msk.f32.vlgmr.msra.gmra.mxu1 %vm308_vm4, %v1277_v38 }
  0xa0   : > { %1293 = vmatpush.msk.msrb.mxu3 %vm312_vm3, %v471_v41 }
  0xa4   : > { %v277_v42 = vpop.permute.xlu1 %276  ;;  %v301_v43 = vpop.permute.xlu0 %300 }
  0xa5   : > { %v305_v44 = vsel %vm302_vm0, %v301_v43, %v297_v29  ;;  %v303_v45 = vsel %vm302_vm0, %v299_v36, %v301_v43  ;;  %v283_v46 = vsel %vm282_vm1, %v277_v42, %v279_v35  ;;  %v284_v47 = vsel %vm282_vm1, %v275_v32, %v277_v42 }
  0xa6   : > { %1278 = vmatpush.msk.msra.mxu0 %vm312_vm3, %v305_v44  ;;  %1282 = vmatpush.msk.msra.mxu2 %vm312_vm3, %v303_v45 }
  0xa7   : > { %1288 = vmatpush.msk.msrb.mxu1 %vm312_vm3, %v283_v46  ;;  %1279 = vmatmul.msk.f32.vlgmr.msra.gmra.mxu0 %vm308_vm4, %v1277_v38 }
  0xa8   : > { %1283 = vmatmul.msk.f32.vlgmr.msra.gmra.mxu2 %vm308_vm4, %v1277_v38  ;;  %1286 = vmatpush.msk.msrb.mxu0 %vm312_vm3, %v284_v47 }
  0xa9   : > { %1294 = vmatmul.msk.f32.vlgmr.msrb.gmra.mxu3 %vm308_vm4, %v1290_v48  ;;  %1289 = vmatmul.msk.f32.vlgmr.msrb.gmra.mxu1 %vm308_vm4, %v286_v37 }
  0xac   : > { %v468_v50 = vpop.permute.xlu0 %467  ;;  %v562_v51 = vpop.permute.xlu1 %561 }
  0xad   : > { %v470_v52 = vsel %vm469_vm2, %v466_v34, %v468_v50  ;;  %v472_v53 = vsel %vm469_vm2, %v468_v50, %v464_v30  ;;  %v566_v54 = vsel %vm565_vm5, %v562_v51, %v564_v49  ;;  %v832_v59 = vpop.permute.xlu2 %831 }
  0xae   : > { %1291 = vmatpush.msk.msrb.mxu2 %vm312_vm3, %v472_v53  ;;  %1295 = vmatpush.msk.msra.mxu0 %vm312_vm3, %v470_v52 }
  0xaf   : > { %1287 = vmatmul.msk.f32.vlgmr.msrb.gmra.mxu0 %vm308_vm4, %v286_v37  ;;  %1302 = vmatpush.msk.msra.mxu3 %vm312_vm3, %v566_v54 }
  0xb0   : > { %1292 = vmatmul.msk.f32.vlgmr.msrb.gmra.mxu2 %vm308_vm4, %v1290_v48  ;;  %1305 = vmatpush.msk.msrb.mxu0 %vm312_vm3, %v1599_v14 }
  0xb1   : > { %1303 = vmatmul.msk.f32.vlgmr.msra.gmra.mxu3 %vm308_vm4, %v1297_v55 }
  0xb4   : > { %v560_v56 = vpop.permute.xlu0 %559 }
  0xb5   : > { %v567_v57 = vsel %vm565_vm5, %v560_v56, %v562_v51  ;;  %v568_v58 = vsel %vm565_vm5, %v564_v49, %v560_v56  ;;  %v836_v4 = vpop.permute.xlu2 %835 }
  0xb6   : > { %1298 = vmatpush.msk.msra.mxu1 %vm312_vm3, %v568_v58  ;;  %1300 = vmatpush.msk.msra.mxu2 %vm312_vm3, %v567_v57  ;;  %v840_v13 = vsel %vm837_vm7, %v836_v4, %v832_v59 }
  0xb7   : > { %1296 = vmatmul.msk.f32.vlgmr.msra.gmra.mxu0 %vm308_vm4, %v1290_v48  ;;  %1299 = vmatmul.msk.f32.vlgmr.msra.gmra.mxu1 %vm308_vm4, %v1297_v55 }
  0xb8   : > { %1301 = vmatmul.msk.f32.vlgmr.msra.gmra.mxu2 %vm308_vm4, %v1297_v55  ;;  %1307 = vmatpush.msk.msrb.mxu1 %vm312_vm3, %v1601_v15 }
  0xb9   : > { %1309 = vmatpush.msk.msrb.mxu2 %vm312_vm3, %v1603_v16 }
  0xbc   : > { %v738_v63 = vpop.permute.xlu1 %737  ;;  %v736_v0 = vpop.permute.xlu0 %735 }
  0xbd   : > { %v743_v2 = vsel %vm741_vm6, %v736_v0, %v738_v63  ;;  %v928_v12 = vpop.permute.xlu2 %927 }
  0xbe   : > { %1312 = vmatpush.msk.msrb.mxu3 %vm312_vm3, %v743_v2 }
  0xbf   : > { %1306 = vmatmul.msk.f32.vlgmr.msrb.gmra.mxu0 %vm308_vm4, %v1304_v1  ;;  %1308 = vmatmul.msk.f32.vlgmr.msrb.gmra.mxu1 %vm308_vm4, %v1304_v1 }
  0xc0   : > { %1310 = vmatmul.msk.f32.vlgmr.msrb.gmra.mxu2 %vm308_vm4, %v1304_v1  ;;  %1313 = vmatmul.msk.f32.vlgmr.msrb.gmra.mxu3 %vm308_vm4, %v1311_v3 }
  0xc4   : > { %v740_v5 = vpop.permute.xlu1 %739  ;;  %v834_v6 = vpop.permute.xlu0 %833 }
  0xc5   : > { %v742_v7 = vsel %vm741_vm6, %v738_v63, %v740_v5  ;;  %v744_v8 = vsel %vm741_vm6, %v740_v5, %v736_v0  ;;  %v838_v9 = vsel %vm837_vm7, %v834_v6, %v836_v4  ;;  %v839_v10 = vsel %vm837_vm7, %v832_v59, %v834_v6  ;;  %v1026_v20 = vpop.permute.xlu2 %1025 }
  0xc6   : > { %1314 = vmatpush.msk.msra.mxu0 %vm312_vm3, %v742_v7  ;;  %1316 = vmatpush.msk.msra.mxu1 %vm312_vm3, %v744_v8 }
  0xc7   : > { %1319 = vmatpush.msk.msra.mxu2 %vm312_vm3, %v839_v10  ;;  %1321 = vmatpush.msk.msra.mxu3 %vm312_vm3, %v838_v9 }
  0xc8   : > { %1315 = vmatmul.msk.f32.vlgmr.msra.gmra.mxu0 %vm308_vm4, %v1311_v3  ;;  %1317 = vmatmul.msk.f32.vlgmr.msra.gmra.mxu1 %vm308_vm4, %v1311_v3 }
  0xc9   : > { %1320 = vmatmul.msk.f32.vlgmr.msra.gmra.mxu2 %vm308_vm4, %v1318_v11  ;;  %1322 = vmatmul.msk.f32.vlgmr.msra.gmra.mxu3 %vm308_vm4, %v1318_v11 }
  0xca   : > { %1323 = vmatpush.msk.msrb.mxu0 %vm312_vm3, %v840_v13 }
  0xcc   : > { %v930_v14 = vpop.permute.xlu0 %929 }
  0xcd   : > { %v932_v15 = vpop.permute.xlu1 %931  ;;  %v935_v16 = vsel %vm933_vm8, %v928_v12, %v930_v14 }
  0xce   : > { %v934_v18 = vsel %vm933_vm8, %v930_v14, %v932_v15  ;;  %v936_v19 = vsel %vm933_vm8, %v932_v15, %v928_v12  ;;  %1326 = vmatpush.msk.msrb.mxu1 %vm312_vm3, %v935_v16 }
  0xcf   : > { %1328 = vmatpush.msk.msrb.mxu2 %vm312_vm3, %v934_v18  ;;  %1330 = vmatpush.msk.msrb.mxu3 %vm312_vm3, %v936_v19 }
  0xd0   : > { %1324 = vmatmul.msk.f32.vlgmr.msrb.gmra.mxu0 %vm308_vm4, %v1318_v11  ;;  %1327 = vmatmul.msk.f32.vlgmr.msrb.gmra.mxu1 %vm308_vm4, %v1325_v17 }
  0xd1   : > { %1329 = vmatmul.msk.f32.vlgmr.msrb.gmra.mxu2 %vm308_vm4, %v1325_v17  ;;  %1331 = vmatmul.msk.f32.vlgmr.msrb.gmra.mxu3 %vm308_vm4, %v1325_v17 }
  0xd4   : > { %v1024_v21 = vpop.permute.xlu0 %1023 }
  0xd5   : > { %v1028_v22 = vpop.permute.xlu1 %1027  ;;  %v1031_v23 = vsel %vm1029_vm9, %v1024_v21, %v1026_v20 }
  0xd6   : > { %v1030_v25 = vsel %vm1029_vm9, %v1026_v20, %v1028_v22  ;;  %v1032_v26 = vsel %vm1029_vm9, %v1028_v22, %v1024_v21  ;;  %1333 = vmatpush.msk.msra.mxu0 %vm312_vm3, %v1031_v23 }
  0xd7   : > { %1335 = vmatpush.msk.msra.mxu1 %vm312_vm3, %v1030_v25  ;;  %1337 = vmatpush.msk.msra.mxu2 %vm312_vm3, %v1032_v26 }
  0xd8   : > { %1334 = vmatmul.msk.f32.vlgmr.msra.gmra.mxu0 %vm308_vm4, %v1332_v24  ;;  %1336 = vmatmul.msk.f32.vlgmr.msra.gmra.mxu1 %vm308_vm4, %v1332_v24 }
  0xd9   : > { %1338 = vmatmul.msk.f32.vlgmr.msra.gmra.mxu2 %vm308_vm4, %v1332_v24 }
  0xdc   : > { %v1114_v3 = vpop.permute.xlu0 %1113 }
  0xdd   : > { %v1123_v10 = vpop.permute.xlu1 %1122 }
 0x11c   : > { %v359_v27 = vpop.f32.mrf.mxu1 }
 0x122   : > { %v411_v29 = vpop.f32.mrf.mxu3 }
 0x124   : > { %v339_v28 = vpop.f32.mrf.mxu0 }
 0x125   : > { %v412_v42 = vadd.f32 %v411_v29, %v339_v28 }
 0x126   : > { %v451_v32 = vpop.f32.mrf.mxu1 }
 0x12b   : > { %v379_v30 = vpop.f32.mrf.mxu2 }
 0x12c   : > { %v431_v31 = vpop.f32.mrf.mxu0  ;;  %v524_v33 = vpop.f32.mrf.mxu3  ;;  %v452_v50 = vadd.f32 %v451_v32, %v379_v30 }
 0x12d   : > { %v432_v44 = vadd.f32 %v431_v31, %v359_v27 }
 0x12f   : > { %v548_v48 = vadd.f32 %v524_v33, %v432_v44 }
 0x133   : > { %v504_v34 = vpop.f32.mrf.mxu2 }
 0x134   : > { %v544_v35 = vpop.f32.mrf.mxu0  ;;  %v600_v36 = vpop.f32.mrf.mxu1  ;;  %v547_v47 = vadd.f32 %v504_v34, %v412_v42 }
 0x135   : > { %v640_v37 = vpop.f32.mrf.mxu3  ;;  %v549_v54 = vadd.f32 %v544_v35, %v452_v50 }
 0x136   : > { %v643_v49 = vadd.f32 %v600_v36, %v547_v47 }
 0x137   : > { %v645_v61 = vadd.f32 %v640_v37, %v549_v54 }
 0x13b   : > { %v620_v38 = vpop.f32.mrf.mxu2 }
 0x13c   : > { %v680_v39 = vpop.f32.mrf.mxu0  ;;  %v700_v40 = vpop.f32.mrf.mxu1  ;;  %v644_v51 = vadd.f32 %v620_v38, %v548_v48 }
 0x13d   : > { %v723_v52 = vadd.f32 %v680_v39, %v643_v49 }
 0x13e   : > { %v724_v59 = vadd.f32 %v700_v40, %v644_v51 }
 0x143   : > { %v720_v41 = vpop.f32.mrf.mxu2  ;;  %v776_v43 = vpop.f32.mrf.mxu3 }
 0x144   : > { %v819_v57 = vadd.f32 %v776_v43, %v723_v52  ;;  %v725_v63 = vadd.f32 %v720_v41, %v645_v61 }
 0x145   : > { %v796_v45 = vpop.f32.mrf.mxu0  ;;  %v816_v46 = vpop.f32.mrf.mxu1 }
 0x146   : > { %v820_v62 = vadd.f32 %v796_v45, %v724_v59  ;;  %v821_v8 = vadd.f32 %v816_v46, %v725_v63 }
 0x14c   : > { %v872_v53 = vpop.f32.mrf.mxu2  ;;  %v892_v58 = vpop.f32.mrf.mxu3 }
 0x14d   : > { %v912_v55 = vpop.f32.mrf.mxu0  ;;  %v968_v56 = vpop.f32.mrf.mxu1  ;;  %v915_v60 = vadd.f32 %v872_v53, %v819_v57  ;;  %v916_v0 = vadd.f32 %v892_v58, %v820_v62 }
 0x14e   : > { %v917_v13 = vadd.f32 %v912_v55, %v821_v8 }
 0x14f   : > { %v1011_v1 = vadd.f32 %v968_v56, %v915_v60 }
 0x154   : > { %v988_v2 = vpop.f32.mrf.mxu2  ;;  %v1008_v11 = vpop.f32.mrf.mxu3 }
 0x155   : > { %v1012_v4 = vadd.f32 %v988_v2, %v916_v0  ;;  %v1064_v5 = vpop.f32.mrf.mxu0  ;;  %v1084_v6 = vpop.f32.mrf.mxu1  ;;  %v1013_v16 = vadd.f32 %v1008_v11, %v917_v13 }
 0x156   : > { %v1107_v7 = vadd.f32 %v1064_v5, %v1011_v1 }
 0x157   : > { %v1108_v9 = vadd.f32 %v1084_v6, %v1012_v4 }
 0x158   : > { %v1116_v12 = vmul.f32 %v1114_v3, %v1107_v7 }
 0x159   : > { %v1117_v14 = vmul.f32 %v1114_v3, %v1108_v9 }
 0x15a   : > { %v1125_v15 = vadd.f32 %v1123_v10, %v1116_v12 }
 0x15b   : > { %v1126_v17 = vadd.f32 %v1123_v10, %v1117_v14 }
 0x15c   : > { %v1128_v18 = vmax.f32 %v1125_v15, 0.0  ;;  %v1104_v19 = vpop.f32.mrf.mxu2 }
 0x15d   : > { %v1129_v20 = vmax.f32 %v1126_v17, 0.0  ;;  %v1109_v21 = vadd.f32 %v1104_v19, %v1013_v16 }
 0x15e   : > { %1131 = vst [vmem:[%s243_s12] sm:$0xff] %v1128_v18 }
 0x15f   : > { %1132 = vst [vmem:[%s243_s12 + $0x8] sm:$0xff] %v1129_v20  ;;  %v1118_v22 = vmul.f32 %v1114_v3, %v1109_v21 }
 0x161   : > { %v1127_v23 = vadd.f32 %v1123_v10, %v1118_v22 }
 0x163   : > { %v1130_v24 = vmax.f32 %v1127_v23, 0.0 }
 0x165   : > { %1133 = vst [vmem:[%s243_s12 + $0x10] sm:$0xff] %v1130_v24 }
 0x166   : > { %1438 = shalt.err (!%p1435_p5)
}
 0x167   : > { %1345 = dma.vmem_to_hbm [thread:$0]  (%p1565_p4), %s1151_s13, 384, %s1153_s14, %s1135_s18  }
 0x168 PF: > { %p1351_p6 = scmp.ge.s32.totalorder %s1489_s20, 2  ;;  %s1164_s6 = sand.u32 1, %s1469_s15  }
 0x169   : > { %s1165_s7 = scalar_lea.sflag [#allocation3], %s1164_s6 }
 0x16a   : > { %p1348_p7 = pnand %p1351_p6, %p1572_p8 }
 0x16c   : > { %p1349_p9 = pneg %p1348_p7 }
 0x16e   : > { %1464 = dma.done.wait (%p1349_p9), %s1165_s7, 384  }
 0x16f   : > { %1466 = vsyncadd (%p1349_p9), %s1165_s7, 4294966912  ;;  %s17_s20 = sadd.s32 1, %s1489_s20   ;;  %s1791_s15 = smov %s1473_s16 }
 0x170   : > { %p14_p10 = scmp.ge.s32.totalorder %s17_s20, 4   ;;  %s1792_s16 = smov %s1477_s17 }
 0x171   : > { %s1793_s17 = smov %s1578_s28  ;;  %s1794_s18 = smov %s1485_s19 }
 0x172   : > { %s1795_s19 = smov %s1797_s23  ;;  %16 = sbr.rel (!%p14_p10) target bundleno = 4 (0x4), region = 97 }
 0x177   :  { %1171 = vsyncpa [#allocation3], 1 }
 0x178   :  { %1173 = vsyncpa [#allocation3 + $0x1], 1 }

</bundles_post_ra>
